<compile_context>
chip_gen: v6e
topology: v6e:2x2x1
jax: 0.10.0
libtpu: 0.0.40
codegen_flags: <defaults>
</compile_context>

<pallas_src>
import jax
import jax.numpy as jnp
from jax.experimental import pallas as pl
from jax.experimental.pallas import tpu as pltpu

LANE = 128      # TPU vreg lane width: pad weight/feature lane dims to this
SUBLANE = 8     # f32 sublane group: pad the batch (M) dim of the MLP to this


def _round_up(x, m):
    return (x + m - 1) // m * m


# -----------------------------------------------------------------------------
# Pallas kernel
# -----------------------------------------------------------------------------
def _ensemble_kernel(img_ref,                      # [H+2, W+2, C]        bf16 (per batch elem)
                     wconv_ref, bconv_ref,         # [9, C, F_pad] bf16 / [1, F_pad] f32
                     cov_ref,                      # [B_pad, Dc_pad]      bf16
                     wcov_ref, bcov_ref,           # [Dc_pad, Lc_pad] bf16 / [1, Lc_pad] f32
                     w1_ref, b1_ref,               # [F_pad+Lc_pad, U] bf16 / [1, U] f32
                     w2_ref, b2_ref,               # [U, U] bf16 / [1, U] f32
                     wo_ref, bo_ref,               # [U, OUT_pad] bf16 / [1, OUT_pad] f32
                     out_ref,                      # [B_pad, OUT_pad]     f32
                     img_feat_scr):                # VMEM scratch [B_pad, F_pad] f32
    bidx = pl.program_id(0)
    nb = pl.num_programs(0)

    hp2, wp2, c = img_ref.shape
    h, w = hp2 - 2, wp2 - 2
    hw = h * w
    f_pad = wconv_ref.shape[-1]

    @pl.when(bidx == 0)
    def _init():
        img_feat_scr[...] = jnp.zeros_like(img_feat_scr)

    # ---- image branch: 3x3 "same" conv as 9 shifted bf16 matmuls (no im2col) ----
    x = img_ref[...]                               # [H+2, W+2, C] bf16

    def tap_matmul(tap):
        dy, dx = divmod(tap, 3)
        win = x[dy:dy + h, dx:dx + w, :].reshape(hw, c)        # bf16 [HW, C]
        return jnp.dot(win, wconv_ref[tap],                    # bf16 x bf16 -> f32
                       preferred_element_type=jnp.float32)

    acc = tap_matmul(0)
    for tap in range(1, 9):                         # static unroll, f32 accumulation
        acc = acc + tap_matmul(tap)
    conv = jnp.maximum(acc + bconv_ref[...], 0.0)   # f32 [HW, F_pad]

    # ---- global average pool on the MXU: (1/HW) * ones[1, HW] @ conv ----
    pool = jnp.full((1, hw), 1.0 / hw, dtype=jnp.float32)
    gap = jnp.dot(pool, conv, preferred_element_type=jnp.float32)   # [1, F_pad]
    img_feat_scr[pl.ds(bidx, 1), :] = gap

    # ---- epilogue: covariate branch + ensemble MLP, once, full padded batch ----
    @pl.when(bidx == nb - 1)
    def _epilogue():
        # TODO(synk): covariate_model internals are not in the reference file;
        # stand-in = its latent_layer as a single Linear (no activation).
        cov_lat = (jnp.dot(cov_ref[...], wcov_ref[...],
                           preferred_element_type=jnp.float32)
                   + bcov_ref[...])                              # f32 [B_pad, Lc_pad]

        # concat([resnet_latent, covariate_latent]) == feed the fused W1
        feats = jnp.concatenate([img_feat_scr[...], cov_lat], axis=-1)
        feats = feats.astype(jnp.bfloat16)                       # [B_pad, F_pad+Lc_pad]

        h1 = jnp.maximum(jnp.dot(feats, w1_ref[...],
                                 preferred_element_type=jnp.float32)
                         + b1_ref[...], 0.0)                     # [B_pad, U]
        h2 = jnp.maximum(jnp.dot(h1.astype(jnp.bfloat16), w2_ref[...],
                                 preferred_element_type=jnp.float32)
                         + b2_ref[...], 0.0)                     # [B_pad, U]
        out_ref[...] = (jnp.dot(h2.astype(jnp.bfloat16), wo_ref[...],
                                preferred_element_type=jnp.float32)
                        + bo_ref[...])                           # [B_pad, OUT_pad]


# -----------------------------------------------------------------------------
# Wrapper: per-batch grid, resident padded weights, lane-dense output
# -----------------------------------------------------------------------------
def survival_ensemble_forward(image_data, covariate_data, kparams):
    """image_data: [B, H, W, C] NHWC f32; covariate_data: [B, Dc] f32 -> [B, 1] f32."""
    b, h, w, c = image_data.shape
    dc = covariate_data.shape[1]

    f_pad = kparams["wconv"].shape[-1]
    dc_pad, lc_pad = kparams["wcov"].shape
    k1, u_pad = kparams["w1"].shape
    out_pad = kparams["wout"].shape[-1]
    b_pad = max(SUBLANE, _round_up(b, SUBLANE))
    hw = h * w

    # bf16 image stream (halves HBM traffic); zero "same"-padding for the 3x3 conv.
    img = jnp.pad(image_data.astype(jnp.bfloat16), ((0, 0), (1, 1), (1, 1), (0, 0)))
    cov = jnp.zeros((b_pad, dc_pad), jnp.bfloat16).at[:b, :dc].set(
        covariate_data.astype(jnp.bfloat16))

    # Advisory cost estimate + explicit VMEM budget sized from the blocks below
    # (keeps us well inside v7x's 64 MiB physical VMEM).
    flops = (2 * b * hw * 9 * c * f_pad                 # conv matmuls
             + 2 * b * hw * f_pad                       # GAP matmul
             + 2 * b_pad * (dc_pad * lc_pad + k1 * u_pad
                            + u_pad * u_pad + u_pad * out_pad))
    weight_bytes = sum(int(v.size) * v.dtype.itemsize for v in kparams.values())
    bytes_accessed = (int(img.size) * 2 + int(cov.size) * 2
                      + weight_bytes + b_pad * out_pad * 4)
    block_bytes = (2 * (h + 2) * (w + 2) * c * 2        # image block, double-buffered
                   + 2 * weight_bytes                   # resident weights (conservative x2)
                   + 2 * b_pad * dc_pad * 2             # covariate block
                   + b_pad * (f_pad + out_pad) * 4      # scratch + output
                   + 6 * hw * f_pad * 4)                # conv accumulator / temps headroom
    vmem_limit = int(min(48 << 20, max(4 * block_bytes, 16 << 20)))

    out_padded = pl.pallas_call(
        _ensemble_kernel,
        out_shape=jax.ShapeDtypeStruct((b_pad, out_pad), jnp.float32),
        grid=(b,),
        in_specs=[
            # image: one batch element per grid step (leading dim squeezed)
            pl.BlockSpec((None, h + 2, w + 2, c), lambda i: (i, 0, 0, 0)),
            # all weights / covariates: constant index maps -> VMEM-resident
            pl.BlockSpec((9, c, f_pad), lambda i: (0, 0, 0)),
            pl.BlockSpec((1, f_pad), lambda i: (0, 0)),
            pl.BlockSpec((b_pad, dc_pad), lambda i: (0, 0)),
            pl.BlockSpec((dc_pad, lc_pad), lambda i: (0, 0)),
            pl.BlockSpec((1, lc_pad), lambda i: (0, 0)),
            pl.BlockSpec((k1, u_pad), lambda i: (0, 0)),
            pl.BlockSpec((1, u_pad), lambda i: (0, 0)),
            pl.BlockSpec((u_pad, u_pad), lambda i: (0, 0)),
            pl.BlockSpec((1, u_pad), lambda i: (0, 0)),
            pl.BlockSpec((u_pad, out_pad), lambda i: (0, 0)),
            pl.BlockSpec((1, out_pad), lambda i: (0, 0)),
        ],
        out_specs=pl.BlockSpec((b_pad, out_pad), lambda i: (0, 0)),
        scratch_shapes=[pltpu.VMEM((b_pad, f_pad), jnp.float32)],
        compiler_params=pltpu.CompilerParams(
            # The batch axis carries the pooled-feature scratch and the single
            # output write, so it must stay sequential.
            # TODO(synk): for large B on v7x, split B into (outer, inner) grid axes
            # and mark the outer one "parallel" to shard across the 2 TensorCores.
            dimension_semantics=("arbitrary",),
            vmem_limit_bytes=vmem_limit),
        cost_estimate=pl.CostEstimate(flops=flops, transcendentals=0,
                                      bytes_accessed=bytes_accessed),
    )(img,
      kparams["wconv"], kparams["bconv"],
      cov,
      kparams["wcov"], kparams["bcov"],
      kparams["w1"], kparams["b1"],
      kparams["w2"], kparams["b2"],
      kparams["wout"], kparams["bout"])

    return out_padded[:b, :1]


# -----------------------------------------------------------------------------
# Parameter initialization (logical shapes) and one-time kernel packing
# -----------------------------------------------------------------------------
def _xavier_uniform(key, shape):
    fan_in, fan_out = shape[0], shape[1]
    bound = (6.0 / (fan_in + fan_out)) ** 0.5
    return jax.random.uniform(key, shape, jnp.float32, -bound, bound)


def _linear_default(key, fan_in, shape):
    # PyTorch nn.Linear default: U(-1/sqrt(fan_in), 1/sqrt(fan_in))
    bound = 1.0 / (fan_in ** 0.5)
    return jax.random.uniform(key, shape, jnp.float32, -bound, bound)


def init_params(key, *, in_channels, resnet_latent_dim, cov_dim,
                cov_latent_dim, ensemble_units):
    ks = jax.random.split(key, 8)
    f, lc, u = resnet_latent_dim, cov_latent_dim, ensemble_units
    return {
        # resnet stand-in trunk: 3x3 conv (C -> F)
        "wconv": _xavier_uniform(ks[0], (9 * in_channels, f)).reshape(3, 3, in_channels, f),
        "bconv": jnp.zeros((f,), jnp.float32),
        # covariate stand-in: latent_layer Linear (Dc -> Lc)
        "wcov": _xavier_uniform(ks[1], (cov_dim, lc)),
        "bcov": jnp.zeros((lc,), jnp.float32),
        # ensemble MLP (matches the reference: xavier weights, depth = 2, then Linear -> 1)
        "w1": _xavier_uniform(ks[2], (f + lc, u)),
        "b1": _linear_default(ks[3], f + lc, (u,)),
        "w2": _xavier_uniform(ks[4], (u, u)),
        "b2": _linear_default(ks[5], u, (u,)),
        "wout": _linear_default(ks[6], u, (u, 1)),
        "bout": _linear_default(ks[7], u, (1,)),
    }


def prepare_kernel_params(params):
    """Pad lane dims to 128, pack conv taps, cast matmul operands to bf16 (done once)."""
    wconv = params["wconv"]
    _, _, c, f = wconv.shape
    dc, lc = params["wcov"].shape
    u = params["w2"].shape[0]

    f_pad = _round_up(f, LANE)
    lc_pad = _round_up(lc, LANE)
    dc_pad = _round_up(dc, LANE)
    u_pad = _round_up(u, LANE)
    out_pad = LANE                       # lane-dense output slab; column 0 is the real logit

    def pad2(a, rows, cols):
        return (jnp.zeros((rows, cols), jnp.bfloat16)
                .at[:a.shape[0], :a.shape[1]].set(a.astype(jnp.bfloat16)))

    def pad_bias(bvec, cols):
        return jnp.zeros((1, cols), jnp.float32).at[0, :bvec.shape[0]].set(bvec)

    # fused ensemble layer-1 weight for the [img(F_pad) | cov(Lc_pad)] concat layout
    w1 = params["w1"]
    w1_k = jnp.zeros((f_pad + lc_pad, u_pad), jnp.bfloat16)
    w1_k = w1_k.at[:f, :u].set(w1[:f].astype(jnp.bfloat16))
    w1_k = w1_k.at[f_pad:f_pad + lc, :u].set(w1[f:f + lc].astype(jnp.bfloat16))

    return {
        "wconv": (jnp.zeros((9, c, f_pad), jnp.bfloat16)
                  .at[:, :, :f].set(wconv.reshape(9, c, f).astype(jnp.bfloat16))),
        "bconv": pad_bias(params["bconv"], f_pad),
        "wcov": pad2(params["wcov"], dc_pad, lc_pad),
        "bcov": pad_bias(params["bcov"], lc_pad),
        "w1": w1_k,
        "b1": pad_bias(params["b1"], u_pad),
        "w2": pad2(params["w2"], u_pad, u_pad),
        "b2": pad_bias(params["b2"], u_pad),
        "wout": pad2(params["wout"], u_pad, out_pad),
        "bout": pad_bias(params["bout"], out_pad),
    }


# -----------------------------------------------------------------------------
if __name__ == "__main__":
    B, H, W, C = 2, 16, 16, 4          # small synthetic image (NHWC)
    D_COV = 8                          # covariate feature dim
    RESNET_LATENT = 32                 # resnet_model.fc.in_features stand-in
    COV_LATENT = 16                    # covariate_model.latent_layer.out_features stand-in
    ENSEMBLE_UNITS = 128               # reference default ensemble_units

    key = jax.random.PRNGKey(0)
    k_img, k_cov, k_params = jax.random.split(key, 3)

    image_data = jax.random.normal(k_img, (B, H, W, C), jnp.float32)
    covariate_data = jax.random.normal(k_cov, (B, D_COV), jnp.float32)

    params = init_params(
        k_params,
        in_channels=C,
        resnet_latent_dim=RESNET_LATENT,
        cov_dim=D_COV,
        cov_latent_dim=COV_LATENT,
        ensemble_units=ENSEMBLE_UNITS,
    )
    kparams = prepare_kernel_params(params)   # pad + bf16-cast once, reused every call

    fwd = jax.jit(survival_ensemble_forward)
    out = fwd(image_data, covariate_data, kparams)
    jax.block_until_ready(out)

    assert out.shape == (B, 1) and out.dtype == jnp.float32
    assert bool(jnp.isfinite(out).all())
    print("KERNEL_OK")
</pallas_src>

<mosaic_0001>
module attributes {stable_mosaic.version = 11 : i64} {
  func.func @_ensemble_kernel(%arg0: i32, %arg1: memref<1x18x18x4xbf16, #tpu.memory_space<vmem>>, %arg2: memref<9x4x128xbf16, #tpu.memory_space<vmem>>, %arg3: memref<1x128xf32, #tpu.memory_space<vmem>>, %arg4: memref<8x128xbf16, #tpu.memory_space<vmem>>, %arg5: memref<128x128xbf16, #tpu.memory_space<vmem>>, %arg6: memref<1x128xf32, #tpu.memory_space<vmem>>, %arg7: memref<256x128xbf16, #tpu.memory_space<vmem>>, %arg8: memref<1x128xf32, #tpu.memory_space<vmem>>, %arg9: memref<128x128xbf16, #tpu.memory_space<vmem>>, %arg10: memref<1x128xf32, #tpu.memory_space<vmem>>, %arg11: memref<128x128xbf16, #tpu.memory_space<vmem>>, %arg12: memref<1x128xf32, #tpu.memory_space<vmem>>, %arg13: memref<8x128xf32, #tpu.memory_space<vmem>>, %arg14: memref<8x128xf32, #tpu.memory_space<vmem>>) attributes {dimension_semantics = [#tpu.dimension_semantics<arbitrary>], iteration_bounds = array<i64: 2>, scalar_prefetch = 0 : i64, scratch_operands = 1 : i64, tpu.core_type = #tpu.core_type<tc>, window_params = [{transform_indices = @transform_0, window_bounds = array<i64: 1, 18, 18, 4>}, {pipeline_mode = #tpu.pipeline_mode<synchronous>, transform_indices = @transform_1, window_bounds = array<i64: 9, 4, 128>}, {pipeline_mode = #tpu.pipeline_mode<synchronous>, transform_indices = @transform_2, window_bounds = array<i64: 1, 128>}, {pipeline_mode = #tpu.pipeline_mode<synchronous>, transform_indices = @transform_3, window_bounds = array<i64: 8, 128>}, {pipeline_mode = #tpu.pipeline_mode<synchronous>, transform_indices = @transform_4, window_bounds = array<i64: 128, 128>}, {pipeline_mode = #tpu.pipeline_mode<synchronous>, transform_indices = @transform_5, window_bounds = array<i64: 1, 128>}, {pipeline_mode = #tpu.pipeline_mode<synchronous>, transform_indices = @transform_6, window_bounds = array<i64: 256, 128>}, {pipeline_mode = #tpu.pipeline_mode<synchronous>, transform_indices = @transform_7, window_bounds = array<i64: 1, 128>}, {pipeline_mode = #tpu.pipeline_mode<synchronous>, transform_indices = @transform_8, window_bounds = array<i64: 128, 128>}, {pipeline_mode = #tpu.pipeline_mode<synchronous>, transform_indices = @transform_9, window_bounds = array<i64: 1, 128>}, {pipeline_mode = #tpu.pipeline_mode<synchronous>, transform_indices = @transform_10, window_bounds = array<i64: 128, 128>}, {pipeline_mode = #tpu.pipeline_mode<synchronous>, transform_indices = @transform_11, window_bounds = array<i64: 1, 128>}, {pipeline_mode = #tpu.pipeline_mode<synchronous>, transform_indices = @transform_12, window_bounds = array<i64: 8, 128>}]} {
    %c0_i32 = arith.constant 0 : i32
    %0 = arith.cmpi eq, %arg0, %c0_i32 : i32
    %1 = arith.extui %0 : i1 to i32
    %c0_i32_0 = arith.constant 0 : i32
    %2 = arith.cmpi ne, %1, %c0_i32_0 : i32
    scf.if %2 {
      %cst_38 = arith.constant 0.000000e+00 : f32
      %70 = vector.broadcast %cst_38 : f32 to vector<8x128xf32>
      %c0_39 = arith.constant 0 : index
      %c0_40 = arith.constant 0 : index
      %71 = vector.load %arg14[%c0_39, %c0_40] : memref<8x128xf32, #tpu.memory_space<vmem>>, vector<8x128xf32>
      tpu.vector_store %arg14[%c0_39, %c0_40], %70 {strides = array<i32>} : memref<8x128xf32, #tpu.memory_space<vmem>>, vector<8x128xf32>,
    } else {
    }
    %c0 = arith.constant 0 : index
    %c0_1 = arith.constant 0 : index
    %c0_2 = arith.constant 0 : index
    %c0_3 = arith.constant 0 : index
    %3 = vector.load %arg1[%c0, %c0_1, %c0_2, %c0_3] : memref<1x18x18x4xbf16, #tpu.memory_space<vmem>>, vector<1x18x18x4xbf16>
    %4 = vector.shape_cast %3 : vector<1x18x18x4xbf16> to vector<18x18x4xbf16>
    %5 = vector.extract_strided_slice %4 {offsets = [0, 0, 0], sizes = [16, 16, 4], strides = [1, 1, 1]} : vector<18x18x4xbf16> to vector<16x16x4xbf16>
    %6 = vector.shape_cast %5 : vector<16x16x4xbf16> to vector<256x4xbf16>
    %c0_4 = arith.constant 0 : index
    %c0_5 = arith.constant 0 : index
    %c0_6 = arith.constant 0 : index
    %7 = vector.load %arg2[%c0_4, %c0_5, %c0_6] : memref<9x4x128xbf16, #tpu.memory_space<vmem>>, vector<1x4x128xbf16>
    %8 = vector.shape_cast %7 : vector<1x4x128xbf16> to vector<4x128xbf16>
    %cst = arith.constant dense<0.000000e+00> : vector<256x128xf32>
    %9 = tpu.matmul %6, %8, %cst {dimension_numbers = #tpu.dot_dimension_numbers<[1], [0], [0], [1], [0, 0, 1, 1], [], []>} : vector<256x4xbf16>, vector<4x128xbf16>, vector<256x128xf32> -> vector<256x128xf32>
    %10 = vector.extract_strided_slice %4 {offsets = [0, 1, 0], sizes = [16, 16, 4], strides = [1, 1, 1]} : vector<18x18x4xbf16> to vector<16x16x4xbf16>
    %11 = vector.shape_cast %10 : vector<16x16x4xbf16> to vector<256x4xbf16>
    %c1 = arith.constant 1 : index
    %c0_7 = arith.constant 0 : index
    %c0_8 = arith.constant 0 : index
    %12 = vector.load %arg2[%c1, %c0_7, %c0_8] : memref<9x4x128xbf16, #tpu.memory_space<vmem>>, vector<1x4x128xbf16>
    %13 = vector.shape_cast %12 : vector<1x4x128xbf16> to vector<4x128xbf16>
    %cst_9 = arith.constant dense<0.000000e+00> : vector<256x128xf32>
    %14 = tpu.matmul %11, %13, %cst_9 {dimension_numbers = #tpu.dot_dimension_numbers<[1], [0], [0], [1], [0, 0, 1, 1], [], []>} : vector<256x4xbf16>, vector<4x128xbf16>, vector<256x128xf32> -> vector<256x128xf32>
    %15 = arith.addf %9, %14 : vector<256x128xf32>
    %16 = vector.extract_strided_slice %4 {offsets = [0, 2, 0], sizes = [16, 16, 4], strides = [1, 1, 1]} : vector<18x18x4xbf16> to vector<16x16x4xbf16>
    %17 = vector.shape_cast %16 : vector<16x16x4xbf16> to vector<256x4xbf16>
    %c2 = arith.constant 2 : index
    %c0_10 = arith.constant 0 : index
    %c0_11 = arith.constant 0 : index
    %18 = vector.load %arg2[%c2, %c0_10, %c0_11] : memref<9x4x128xbf16, #tpu.memory_space<vmem>>, vector<1x4x128xbf16>
    %19 = vector.shape_cast %18 : vector<1x4x128xbf16> to vector<4x128xbf16>
    %cst_12 = arith.constant dense<0.000000e+00> : vector<256x128xf32>
    %20 = tpu.matmul %17, %19, %cst_12 {dimension_numbers = #tpu.dot_dimension_numbers<[1], [0], [0], [1], [0, 0, 1, 1], [], []>} : vector<256x4xbf16>, vector<4x128xbf16>, vector<256x128xf32> -> vector<256x128xf32>
    %21 = arith.addf %15, %20 : vector<256x128xf32>
    %22 = vector.extract_strided_slice %4 {offsets = [1, 0, 0], sizes = [16, 16, 4], strides = [1, 1, 1]} : vector<18x18x4xbf16> to vector<16x16x4xbf16>
    %23 = vector.shape_cast %22 : vector<16x16x4xbf16> to vector<256x4xbf16>
    %c3 = arith.constant 3 : index
    %c0_13 = arith.constant 0 : index
    %c0_14 = arith.constant 0 : index
    %24 = vector.load %arg2[%c3, %c0_13, %c0_14] : memref<9x4x128xbf16, #tpu.memory_space<vmem>>, vector<1x4x128xbf16>
    %25 = vector.shape_cast %24 : vector<1x4x128xbf16> to vector<4x128xbf16>
    %cst_15 = arith.constant dense<0.000000e+00> : vector<256x128xf32>
    %26 = tpu.matmul %23, %25, %cst_15 {dimension_numbers = #tpu.dot_dimension_numbers<[1], [0], [0], [1], [0, 0, 1, 1], [], []>} : vector<256x4xbf16>, vector<4x128xbf16>, vector<256x128xf32> -> vector<256x128xf32>
    %27 = arith.addf %21, %26 : vector<256x128xf32>
    %28 = vector.extract_strided_slice %4 {offsets = [1, 1, 0], sizes = [16, 16, 4], strides = [1, 1, 1]} : vector<18x18x4xbf16> to vector<16x16x4xbf16>
    %29 = vector.shape_cast %28 : vector<16x16x4xbf16> to vector<256x4xbf16>
    %c4 = arith.constant 4 : index
    %c0_16 = arith.constant 0 : index
    %c0_17 = arith.constant 0 : index
    %30 = vector.load %arg2[%c4, %c0_16, %c0_17] : memref<9x4x128xbf16, #tpu.memory_space<vmem>>, vector<1x4x128xbf16>
    %31 = vector.shape_cast %30 : vector<1x4x128xbf16> to vector<4x128xbf16>
    %cst_18 = arith.constant dense<0.000000e+00> : vector<256x128xf32>
    %32 = tpu.matmul %29, %31, %cst_18 {dimension_numbers = #tpu.dot_dimension_numbers<[1], [0], [0], [1], [0, 0, 1, 1], [], []>} : vector<256x4xbf16>, vector<4x128xbf16>, vector<256x128xf32> -> vector<256x128xf32>
    %33 = arith.addf %27, %32 : vector<256x128xf32>
    %34 = vector.extract_strided_slice %4 {offsets = [1, 2, 0], sizes = [16, 16, 4], strides = [1, 1, 1]} : vector<18x18x4xbf16> to vector<16x16x4xbf16>
    %35 = vector.shape_cast %34 : vector<16x16x4xbf16> to vector<256x4xbf16>
    %c5 = arith.constant 5 : index
    %c0_19 = arith.constant 0 : index
    %c0_20 = arith.constant 0 : index
    %36 = vector.load %arg2[%c5, %c0_19, %c0_20] : memref<9x4x128xbf16, #tpu.memory_space<vmem>>, vector<1x4x128xbf16>
    %37 = vector.shape_cast %36 : vector<1x4x128xbf16> to vector<4x128xbf16>
    %cst_21 = arith.constant dense<0.000000e+00> : vector<256x128xf32>
    %38 = tpu.matmul %35, %37, %cst_21 {dimension_numbers = #tpu.dot_dimension_numbers<[1], [0], [0], [1], [0, 0, 1, 1], [], []>} : vector<256x4xbf16>, vector<4x128xbf16>, vector<256x128xf32> -> vector<256x128xf32>
    %39 = arith.addf %33, %38 : vector<256x128xf32>
    %40 = vector.extract_strided_slice %4 {offsets = [2, 0, 0], sizes = [16, 16, 4], strides = [1, 1, 1]} : vector<18x18x4xbf16> to vector<16x16x4xbf16>
    %41 = vector.shape_cast %40 : vector<16x16x4xbf16> to vector<256x4xbf16>
    %c6 = arith.constant 6 : index
    %c0_22 = arith.constant 0 : index
    %c0_23 = arith.constant 0 : index
    %42 = vector.load %arg2[%c6, %c0_22, %c0_23] : memref<9x4x128xbf16, #tpu.memory_space<vmem>>, vector<1x4x128xbf16>
    %43 = vector.shape_cast %42 : vector<1x4x128xbf16> to vector<4x128xbf16>
    %cst_24 = arith.constant dense<0.000000e+00> : vector<256x128xf32>
    %44 = tpu.matmul %41, %43, %cst_24 {dimension_numbers = #tpu.dot_dimension_numbers<[1], [0], [0], [1], [0, 0, 1, 1], [], []>} : vector<256x4xbf16>, vector<4x128xbf16>, vector<256x128xf32> -> vector<256x128xf32>
    %45 = arith.addf %39, %44 : vector<256x128xf32>
    %46 = vector.extract_strided_slice %4 {offsets = [2, 1, 0], sizes = [16, 16, 4], strides = [1, 1, 1]} : vector<18x18x4xbf16> to vector<16x16x4xbf16>
    %47 = vector.shape_cast %46 : vector<16x16x4xbf16> to vector<256x4xbf16>
    %c7 = arith.constant 7 : index
    %c0_25 = arith.constant 0 : index
    %c0_26 = arith.constant 0 : index
    %48 = vector.load %arg2[%c7, %c0_25, %c0_26] : memref<9x4x128xbf16, #tpu.memory_space<vmem>>, vector<1x4x128xbf16>
    %49 = vector.shape_cast %48 : vector<1x4x128xbf16> to vector<4x128xbf16>
    %cst_27 = arith.constant dense<0.000000e+00> : vector<256x128xf32>
    %50 = tpu.matmul %47, %49, %cst_27 {dimension_numbers = #tpu.dot_dimension_numbers<[1], [0], [0], [1], [0, 0, 1, 1], [], []>} : vector<256x4xbf16>, vector<4x128xbf16>, vector<256x128xf32> -> vector<256x128xf32>
    %51 = arith.addf %45, %50 : vector<256x128xf32>
    %52 = vector.extract_strided_slice %4 {offsets = [2, 2, 0], sizes = [16, 16, 4], strides = [1, 1, 1]} : vector<18x18x4xbf16> to vector<16x16x4xbf16>
    %53 = vector.shape_cast %52 : vector<16x16x4xbf16> to vector<256x4xbf16>
    %c8 = arith.constant 8 : index
    %c0_28 = arith.constant 0 : index
    %c0_29 = arith.constant 0 : index
    %54 = vector.load %arg2[%c8, %c0_28, %c0_29] : memref<9x4x128xbf16, #tpu.memory_space<vmem>>, vector<1x4x128xbf16>
    %55 = vector.shape_cast %54 : vector<1x4x128xbf16> to vector<4x128xbf16>
    %cst_30 = arith.constant dense<0.000000e+00> : vector<256x128xf32>
    %56 = tpu.matmul %53, %55, %cst_30 {dimension_numbers = #tpu.dot_dimension_numbers<[1], [0], [0], [1], [0, 0, 1, 1], [], []>} : vector<256x4xbf16>, vector<4x128xbf16>, vector<256x128xf32> -> vector<256x128xf32>
    %57 = arith.addf %51, %56 : vector<256x128xf32>
    %c0_31 = arith.constant 0 : index
    %c0_32 = arith.constant 0 : index
    %58 = vector.load %arg3[%c0_31, %c0_32] : memref<1x128xf32, #tpu.memory_space<vmem>>, vector<1x128xf32>
    %59 = vector.broadcast %58 : vector<1x128xf32> to vector<256x128xf32>
    %60 = arith.addf %57, %59 : vector<256x128xf32>
    %cst_33 = arith.constant 0.000000e+00 : f32
    %61 = vector.broadcast %cst_33 : f32 to vector<256x128xf32>
    %62 = arith.maximumf %60, %61 : vector<256x128xf32>
    %cst_34 = arith.constant 3.906250e-03 : f32
    %63 = vector.broadcast %cst_34 : f32 to vector<1x256xf32>
    %cst_35 = arith.constant dense<0.000000e+00> : vector<1x128xf32>
    %64 = tpu.matmul %63, %62, %cst_35 {dimension_numbers = #tpu.dot_dimension_numbers<[1], [0], [0], [1], [0, 0, 1, 1], [], []>} : vector<1x256xf32>, vector<256x128xf32>, vector<1x128xf32> -> vector<1x128xf32>
    %65 = arith.index_cast %arg0 : i32 to index
    %c0_36 = arith.constant 0 : index
    %66 = vector.load %arg14[%65, %c0_36] : memref<8x128xf32, #tpu.memory_space<vmem>>, vector<1x128xf32>
    tpu.vector_store %arg14[%65, %c0_36], %64 {strides = array<i32>} : memref<8x128xf32, #tpu.memory_space<vmem>>, vector<1x128xf32>,
    %c1_i32 = arith.constant 1 : i32
    %67 = arith.cmpi eq, %arg0, %c1_i32 : i32
    %68 = arith.extui %67 : i1 to i32
    %c0_i32_37 = arith.constant 0 : i32
    %69 = arith.cmpi ne, %68, %c0_i32_37 : i32
    scf.if %69 {
      %c0_38 = arith.constant 0 : index
      %c0_39 = arith.constant 0 : index
      %70 = vector.load %arg4[%c0_38, %c0_39] : memref<8x128xbf16, #tpu.memory_space<vmem>>, vector<8x128xbf16>
      %c0_40 = arith.constant 0 : index
      %c0_41 = arith.constant 0 : index
      %71 = vector.load %arg5[%c0_40, %c0_41] : memref<128x128xbf16, #tpu.memory_space<vmem>>, vector<128x128xbf16>
      %cst_42 = arith.constant dense<0.000000e+00> : vector<8x128xf32>
      %72 = tpu.matmul %70, %71, %cst_42 {dimension_numbers = #tpu.dot_dimension_numbers<[1], [0], [0], [1], [0, 0, 1, 1], [], []>} : vector<8x128xbf16>, vector<128x128xbf16>, vector<8x128xf32> -> vector<8x128xf32>
      %c0_43 = arith.constant 0 : index
      %c0_44 = arith.constant 0 : index
      %73 = vector.load %arg6[%c0_43, %c0_44] : memref<1x128xf32, #tpu.memory_space<vmem>>, vector<1x128xf32>
      %74 = vector.broadcast %73 : vector<1x128xf32> to vector<8x128xf32>
      %75 = arith.addf %72, %74 : vector<8x128xf32>
      %c0_45 = arith.constant 0 : index
      %c0_46 = arith.constant 0 : index
      %76 = vector.load %arg14[%c0_45, %c0_46] : memref<8x128xf32, #tpu.memory_space<vmem>>, vector<8x128xf32>
      %77 = tpu.concatenate %76, %75 in 1 : vector<8x128xf32>, vector<8x128xf32> -> vector<8x256xf32>
      %78 = arith.truncf %77 : vector<8x256xf32> to vector<8x256xbf16>
      %c0_47 = arith.constant 0 : index
      %c0_48 = arith.constant 0 : index
      %79 = vector.load %arg7[%c0_47, %c0_48] : memref<256x128xbf16, #tpu.memory_space<vmem>>, vector<256x128xbf16>
      %cst_49 = arith.constant dense<0.000000e+00> : vector<8x128xf32>
      %80 = tpu.matmul %78, %79, %cst_49 {dimension_numbers = #tpu.dot_dimension_numbers<[1], [0], [0], [1], [0, 0, 1, 1], [], []>} : vector<8x256xbf16>, vector<256x128xbf16>, vector<8x128xf32> -> vector<8x128xf32>
      %c0_50 = arith.constant 0 : index
      %c0_51 = arith.constant 0 : index
      %81 = vector.load %arg8[%c0_50, %c0_51] : memref<1x128xf32, #tpu.memory_space<vmem>>, vector<1x128xf32>
      %82 = vector.broadcast %81 : vector<1x128xf32> to vector<8x128xf32>
      %83 = arith.addf %80, %82 : vector<8x128xf32>
      %cst_52 = arith.constant 0.000000e+00 : f32
      %84 = vector.broadcast %cst_52 : f32 to vector<8x128xf32>
      %85 = arith.maximumf %83, %84 : vector<8x128xf32>
      %86 = arith.truncf %85 : vector<8x128xf32> to vector<8x128xbf16>
      %c0_53 = arith.constant 0 : index
      %c0_54 = arith.constant 0 : index
      %87 = vector.load %arg9[%c0_53, %c0_54] : memref<128x128xbf16, #tpu.memory_space<vmem>>, vector<128x128xbf16>
      %cst_55 = arith.constant dense<0.000000e+00> : vector<8x128xf32>
      %88 = tpu.matmul %86, %87, %cst_55 {dimension_numbers = #tpu.dot_dimension_numbers<[1], [0], [0], [1], [0, 0, 1, 1], [], []>} : vector<8x128xbf16>, vector<128x128xbf16>, vector<8x128xf32> -> vector<8x128xf32>
      %c0_56 = arith.constant 0 : index
      %c0_57 = arith.constant 0 : index
      %89 = vector.load %arg10[%c0_56, %c0_57] : memref<1x128xf32, #tpu.memory_space<vmem>>, vector<1x128xf32>
      %90 = vector.broadcast %89 : vector<1x128xf32> to vector<8x128xf32>
      %91 = arith.addf %88, %90 : vector<8x128xf32>
      %cst_58 = arith.constant 0.000000e+00 : f32
      %92 = vector.broadcast %cst_58 : f32 to vector<8x128xf32>
      %93 = arith.maximumf %91, %92 : vector<8x128xf32>
      %94 = arith.truncf %93 : vector<8x128xf32> to vector<8x128xbf16>
      %c0_59 = arith.constant 0 : index
      %c0_60 = arith.constant 0 : index
      %95 = vector.load %arg11[%c0_59, %c0_60] : memref<128x128xbf16, #tpu.memory_space<vmem>>, vector<128x128xbf16>
      %cst_61 = arith.constant dense<0.000000e+00> : vector<8x128xf32>
      %96 = tpu.matmul %94, %95, %cst_61 {dimension_numbers = #tpu.dot_dimension_numbers<[1], [0], [0], [1], [0, 0, 1, 1], [], []>} : vector<8x128xbf16>, vector<128x128xbf16>, vector<8x128xf32> -> vector<8x128xf32>
      %c0_62 = arith.constant 0 : index
      %c0_63 = arith.constant 0 : index
      %97 = vector.load %arg12[%c0_62, %c0_63] : memref<1x128xf32, #tpu.memory_space<vmem>>, vector<1x128xf32>
      %98 = vector.broadcast %97 : vector<1x128xf32> to vector<8x128xf32>
      %99 = arith.addf %96, %98 : vector<8x128xf32>
      %c0_64 = arith.constant 0 : index
      %c0_65 = arith.constant 0 : index
      %100 = vector.load %arg13[%c0_64, %c0_65] : memref<8x128xf32, #tpu.memory_space<vmem>>, vector<8x128xf32>
      tpu.vector_store %arg13[%c0_64, %c0_65], %99 {strides = array<i32>} : memref<8x128xf32, #tpu.memory_space<vmem>>, vector<8x128xf32>,
    } else {
    }
    return
  }
  func.func @transform_0(%arg0: i32) -> (i32, i32, i32, i32) {
    %c0_i32 = arith.constant 0 : i32
    %c0_i32_0 = arith.constant 0 : i32
    %c0_i32_1 = arith.constant 0 : i32
    %c0_i32_2 = arith.constant 0 : i32
    return %arg0, %c0_i32, %c0_i32_0, %c0_i32_1 : i32, i32, i32, i32
  }
  func.func @transform_1(%arg0: i32) -> (i32, i32, i32) {
    %c0_i32 = arith.constant 0 : i32
    %c0_i32_0 = arith.constant 0 : i32
    %c0_i32_1 = arith.constant 0 : i32
    %c0_i32_2 = arith.constant 0 : i32
    return %c0_i32, %c0_i32_0, %c0_i32_1 : i32, i32, i32
  }
  func.func @transform_2(%arg0: i32) -> (i32, i32) {
    %c0_i32 = arith.constant 0 : i32
    %c0_i32_0 = arith.constant 0 : i32
    %c0_i32_1 = arith.constant 0 : i32
    return %c0_i32, %c0_i32_0 : i32, i32
  }
  func.func @transform_3(%arg0: i32) -> (i32, i32) {
    %c0_i32 = arith.constant 0 : i32
    %c0_i32_0 = arith.constant 0 : i32
    %c0_i32_1 = arith.constant 0 : i32
    return %c0_i32, %c0_i32_0 : i32, i32
  }
  func.func @transform_4(%arg0: i32) -> (i32, i32) {
    %c0_i32 = arith.constant 0 : i32
    %c0_i32_0 = arith.constant 0 : i32
    %c0_i32_1 = arith.constant 0 : i32
    return %c0_i32, %c0_i32_0 : i32, i32
  }
  func.func @transform_5(%arg0: i32) -> (i32, i32) {
    %c0_i32 = arith.constant 0 : i32
    %c0_i32_0 = arith.constant 0 : i32
    %c0_i32_1 = arith.constant 0 : i32
    return %c0_i32, %c0_i32_0 : i32, i32
  }
  func.func @transform_6(%arg0: i32) -> (i32, i32) {
    %c0_i32 = arith.constant 0 : i32
    %c0_i32_0 = arith.constant 0 : i32
    %c0_i32_1 = arith.constant 0 : i32
    return %c0_i32, %c0_i32_0 : i32, i32
  }
  func.func @transform_7(%arg0: i32) -> (i32, i32) {
    %c0_i32 = arith.constant 0 : i32
    %c0_i32_0 = arith.constant 0 : i32
    %c0_i32_1 = arith.constant 0 : i32
    return %c0_i32, %c0_i32_0 : i32, i32
  }
  func.func @transform_8(%arg0: i32) -> (i32, i32) {
    %c0_i32 = arith.constant 0 : i32
    %c0_i32_0 = arith.constant 0 : i32
    %c0_i32_1 = arith.constant 0 : i32
    return %c0_i32, %c0_i32_0 : i32, i32
  }
  func.func @transform_9(%arg0: i32) -> (i32, i32) {
    %c0_i32 = arith.constant 0 : i32
    %c0_i32_0 = arith.constant 0 : i32
    %c0_i32_1 = arith.constant 0 : i32
    return %c0_i32, %c0_i32_0 : i32, i32
  }
  func.func @transform_10(%arg0: i32) -> (i32, i32) {
    %c0_i32 = arith.constant 0 : i32
    %c0_i32_0 = arith.constant 0 : i32
    %c0_i32_1 = arith.constant 0 : i32
    return %c0_i32, %c0_i32_0 : i32, i32
  }
  func.func @transform_11(%arg0: i32) -> (i32, i32) {
    %c0_i32 = arith.constant 0 : i32
    %c0_i32_0 = arith.constant 0 : i32
    %c0_i32_1 = arith.constant 0 : i32
    return %c0_i32, %c0_i32_0 : i32, i32
  }
  func.func @transform_12(%arg0: i32) -> (i32, i32) {
    %c0_i32 = arith.constant 0 : i32
    %c0_i32_0 = arith.constant 0 : i32
    %c0_i32_1 = arith.constant 0 : i32
    return %c0_i32, %c0_i32_0 : i32, i32
  }
}

</mosaic_0001>

<bundles_post_ra>
// kernel: survival_ensemble_forward.1
= control target key start
LH: loop header
LB: loop body
LE: loop exit
PB: predicated region body
PF: predicated region fallthrough
CT: control target
= control target key end

     0   :  { %s4858_s21 = smov 0   ;;  %s6482_s0 = inlined_call_operand.vmem [shape: bf16[2,18,18,4], index: 0, kind: input, shape index: {}]   ;;  %s6483_s1 = inlined_call_operand.vmem [shape: bf16[9,4,128], index: 1, kind: input, shape index: {}]   ;;  %s6484_s2 = inlined_call_operand.vmem [shape: f32[1,128], index: 2, kind: input, shape index: {}]   ;;  %s6485_s3 = inlined_call_operand.vmem [shape: bf16[8,128], index: 3, kind: input, shape index: {}]   ;;  %s6486_s4 = inlined_call_operand.vmem [shape: bf16[128,128], index: 4, kind: input, shape index: {}]   ;;  %s6487_s5 = inlined_call_operand.vmem [shape: f32[1,128], index: 5, kind: input, shape index: {}]   ;;  %s6488_s6 = inlined_call_operand.vmem [shape: bf16[256,128], index: 6, kind: input, shape index: {}]   ;;  %s6489_s7 = inlined_call_operand.vmem [shape: f32[1,128], index: 7, kind: input, shape index: {}]   ;;  %s6490_s8 = inlined_call_operand.vmem [shape: bf16[128,128], index: 8, kind: input, shape index: {}]   ;;  %s6491_s9 = inlined_call_operand.vmem [shape: f32[1,128], index: 9, kind: input, shape index: {}]   ;;  %s6492_s10 = inlined_call_operand.vmem [shape: bf16[128,128], index: 10, kind: input, shape index: {}]   ;;  %s6493_s11 = inlined_call_operand.vmem [shape: f32[1,128], index: 11, kind: input, shape index: {}]   ;;  %s6494_s12 = inlined_call_operand.vmem [shape: f32[8,128], index: 12, kind: output, shape index: {}]  }
   0x1 LB: > { %s4864_s22 = sadd.s32 4294967295, %s4787_s21   ;;  %p3816_p0 = scmp.ge.s32.totalorder %s4787_s21, 1  ;;  %s4787_s21 = sphi %s4858_s21, %s22_s21  }
   0x2   : > { %p357_p1 = scmp.lt.s32.totalorder %s4787_s21, 3 }
   0x4   : > { %p358_p2 = pnand %p3816_p0, %p357_p1 }
   0x6   : > { %361 = sbr.rel (%p358_p2) target bundleno = 1620 (0x654), region = 68 }
   0xb   : > { %p394_p3 = scmp.lt.s32.totalorder %s4864_s22, 1  ;;  %p3818_p4 = scmp.ne.s32.totalorder %s4864_s22, 0 }
   0xd   : > { %s395_s23 = scalar_select %p394_p3, %s4864_s22, 1 }
   0xe   : > { %403 = sbr.rel (%p3818_p4) target bundleno = 21 (0x15), region = 72 }
   0xf   : > { %s4710_s24 = smul.u32 216, %s395_s23 }
  0x11   : > { %s4873_s27 = scalar_lea.vmem %s6482_s0, %s4710_s24 }
  0x13   : > { %v4789_v0 = vmov 0.0  }
  0x14   : > { %404 = vst [vmem:[#allocation2] sm:$0xff] %v4789_v0 }
  0x15 PF: > { %v3819_v1 = vld [vmem:[%s6483_s1 + $0x2] sm:$0x3]  ;;  %vm946_vm0 = vcmask 1041408   ;;  %v4886_v4 = vld [vmem:[%s4873_s27 + $0x4] sm:$0xf]  ;;  %vm897_vm3 = vcmask 31744  }
  0x16   : > { %v4880_v2 = vld [vmem:[%s4873_s27] sm:$0xf]  ;;  %4700 = vmatprep.subr.msk.bf16.mxu0 %vm946_vm0, %v3819_v1  ;;  %4701 = vmatprep.subr.msk.bf16.mxu1 %vm946_vm0, %v3819_v1  ;;  %v948_v3 = vsel %vm946_vm0, %v3819_v1, 0  ;;  %v4889_v5 = vld [vmem:[%s4873_s27 + $0x8] sm:$0x1]  ;;  %v473_v8 = vshll.u32 %v4886_v4, 16 }
  0x17   : > { %v464_v6 = vshrl.u32 %v4880_v2, 16  ;;  %4333 = vmatpush3.bf16.msra.mxu0 %v948_v3  ;;  %4699 = vmatpush3.bf16.msra.mxu1 %v948_v3  ;;  %vm460_vm1 = vsmask.f32 3328  ;;  %vm461_vm2 = vsmask.f32 7440  ;;  %v467_v7 = vshll.u32 %v4880_v2, 16 }
  0x18   : > { %v477_v10 = vshrl.u32 %v4886_v4, 16  ;;  %v483_v11 = vshll.u32 %v4889_v5, 16  ;;  %v4897_v12 = vld [vmem:[%s4873_s27 + $0x78] sm:$0xf]  ;;  %v475_v14 = vrot.slane %v473_v8, 5  ;;  %vm4916_vm4 = vmor %vm460_vm1, %vm461_vm2  ;;  %vm1419_vm5 = vcmask 1042432  }
  0x19   : > { %v466_v9 = vrot.slane %v464_v6, 4  ;;  %v469_v13 = vrot.slane %v467_v7, 5  ;;  %v4900_v15 = vld [vmem:[%s4873_s27 + $0x7c] sm:$0xf]  ;;  %v4903_v16 = vld [vmem:[%s4873_s27 + $0x80] sm:$0x1] }
  0x1a   : > { %6537 = vst [vmem:[#allocation3_spill] sm:$0xff] %v4903_v16  ;;  %v479_v17 = vrot.slane %v477_v10, 4  ;;  %v704_v19 = vshrl.u32 %v4897_v12, 16  ;;  %v707_v20 = vshll.u32 %v4897_v12, 16  ;;  %v713_v22 = vshll.u32 %v4900_v15, 16  ;;  %s4092_s14 = scalar_lea.vmem [#allocation2], %s4787_s21 }
  0x1b   : > { %v470_v21 = vor.u32 %v469_v13, %v466_v9  ;;  %v717_v23 = vshrl.u32 %v4900_v15, 16  ;;  %v723_v24 = vshll.u32 %v4903_v16, 16  ;;  %v4912_v25 = vld [vmem:[%s4873_s27 + $0xc] sm:$0xf]  ;;  %v485_v28 = vrot.slane %v483_v11, 5  ;;  %p4045_p5 = scmp.ne.s32.totalorder %s4864_s22, 1 }
  0x1c   : > { %v480_v27 = vor.u32 %v479_v17, %v475_v14  ;;  %v706_v29 = vrot.slane %v704_v19, 4  ;;  %v709_v30 = vrot.slane %v707_v20, 5  ;;  %v4921_v31 = vld [vmem:[%s4873_s27 + $0x10] sm:$0xf]  ;;  %v715_v33 = vrot.slane %v713_v22, 5 }
  0x1d   : > { %v471_v32 = vrot.slane %v470_v21, 4  ;;  %v719_v34 = vrot.slane %v717_v23, 4  ;;  %v725_v35 = vrot.slane %v723_v24, 5  ;;  %v488_v38 = vshrl.u32 %v4912_v25, 16  ;;  %v4928_v42 = vld [vmem:[%s4873_s27 + $0x14] sm:$0x1] }
  0x1e   : > { %v481_v36 = vrot.slane %v480_v27, 4  ;;  %v710_v37 = vor.u32 %v709_v30, %v706_v29  ;;  %v491_v39 = vshll.u32 %v4912_v25, 16  ;;  %v497_v43 = vshll.u32 %v4921_v31, 16  ;;  %v4935_v49 = vld [vmem:[%s4873_s27 + $0x84] sm:$0xf] }
  0x1f   : > { %v476_v40 = vsel %vm4916_vm4, %v471_v32, %v475_v14  ;;  %v720_v41 = vor.u32 %v719_v34, %v715_v33  ;;  %v501_v44 = vshrl.u32 %v4921_v31, 16  ;;  %v490_v47 = vrot.slane %v488_v38, 4  ;;  %6540 = vst [vmem:[#allocation4_spill] sm:$0xff] %v4935_v49  ;;  %v4941_v57 = vld [vmem:[%s4873_s27 + $0x88] sm:$0xf] }
  0x20   : > { %v486_v45 = vsel %vm4916_vm4, %v481_v36, %v485_v28  ;;  %v711_v46 = vrot.slane %v710_v37, 4  ;;  %v493_v48 = vrot.slane %v491_v39, 5  ;;  %v499_v52 = vrot.slane %v497_v43, 5  ;;  %v4950_v62 = vld [vmem:[%s4873_s27 + $0x8c] sm:$0x1] }
  0x21   : > { %v3820_v50 = vcombine.low %v476_v40, %v486_v45  ;;  %v721_v51 = vrot.slane %v720_v41, 4  ;;  %v503_v53 = vrot.slane %v501_v44, 4  ;;  %v507_v56 = vshll.u32 %v4928_v42, 16  ;;  %6541 = vst [vmem:[#allocation5_spill] sm:$0xff] %v4950_v62  ;;  %v4954_v0 = vld [vmem:[%s4873_s27 + $0x18] sm:$0xf] }
  0x22   : > { %v716_v54 = vsel %vm4916_vm4, %v711_v46, %v715_v33  ;;  %v494_v55 = vor.u32 %v493_v48, %v490_v47  ;;  %v728_v63 = vshrl.u32 %v4935_v49, 16  ;;  %v731_v7 = vshll.u32 %v4935_v49, 16  ;;  %v4962_v13 = vld [vmem:[%s4873_s27 + $0x1c] sm:$0xf]  ;;  %v4970_v20 = vld [vmem:[%s4873_s27 + $0x20] sm:$0x1] }
  0x23   : > { %4334 = vmatprep.mubr.msk.bf16.mxu0 %vm897_vm3, %v3820_v50  ;;  %v726_v59 = vsel %vm4916_vm4, %v721_v51, %v725_v35  ;;  %v504_v60 = vor.u32 %v503_v53, %v499_v52  ;;  %v509_v6 = vrot.slane %v507_v56, 5  ;;  %v737_v10 = vshll.u32 %v4941_v57, 16  ;;  %v4977_v28 = vld [vmem:[%s4873_s27 + $0x90] sm:$0xf]  ;;  %v4987_v40 = vld [vmem:[%s4873_s27 + $0x94] sm:$0xf] }
  0x24   : > { %v4956_v1 = vcombine.low %v716_v54, %v726_v59  ;;  %v495_v3 = vrot.slane %v494_v55, 4  ;;  %v730_v9 = vrot.slane %v728_v63, 4  ;;  %v741_v11 = vshrl.u32 %v4941_v57, 16  ;;  %6543 = vst [vmem:[#allocation7_spill] sm:$0xff] %v4977_v28  ;;  %6545 = vst [vmem:[#allocation9_spill] sm:$0xff] %v4987_v40 }
  0x25   : > { %v505_v8 = vrot.slane %v504_v60, 4  ;;  %v733_v17 = vrot.slane %v731_v7, 5  ;;  %v747_v19 = vshll.u32 %v4950_v62, 16  ;;  %v512_v21 = vshrl.u32 %v4954_v0, 16  ;;  %v4992_v48 = vld [vmem:[%s4873_s27 + $0x98] sm:$0x1] }
  0x26   : > { %6542 = vst [vmem:[#allocation6_spill] sm:$0xff] %v4956_v1  ;;  %4354 = vmatprep.mubr.msk.bf16.mxu1 %vm897_vm3, %v4956_v1  ;;  %v500_v14 = vsel %vm4916_vm4, %v495_v3, %v499_v52  ;;  %v739_v23 = vrot.slane %v737_v10, 5  ;;  %v743_v24 = vrot.slane %v741_v11, 4  ;;  %v515_v27 = vshll.u32 %v4954_v0, 16  ;;  %6546 = vst [vmem:[#allocation10_spill] sm:$0xff] %v4992_v48 }
  0x27   : > { %v510_v22 = vsel %vm4916_vm4, %v505_v8, %v509_v6  ;;  %v734_v30 = vor.u32 %v733_v17, %v730_v9  ;;  %v749_v32 = vrot.slane %v747_v19, 5  ;;  %v514_v33 = vrot.slane %v512_v21, 4  ;;  %v4997_v54 = vld [vmem:[%s4873_s27 + $0x24] sm:$0xf]  ;;  %v5007_v8 = vld [vmem:[%s4873_s27 + $0x28] sm:$0xf] }
  0x28   : > { %v4979_v29 = vcombine.low %v500_v14, %v510_v22  ;;  %v744_v34 = vor.u32 %v743_v24, %v739_v23  ;;  %v517_v35 = vrot.slane %v515_v27, 5  ;;  %v521_v36 = vshll.u32 %v4962_v13, 16  ;;  %v5012_v14 = vld [vmem:[%s4873_s27 + $0x2c] sm:$0x1]  ;;  %v5019_v24 = vld [vmem:[%s4873_s27 + $0x9c] sm:$0xf] }
  0x29   : > { %v525_v37 = vshrl.u32 %v4962_v13, 16  ;;  %v735_v38 = vrot.slane %v734_v30, 4  ;;  %v531_v39 = vshll.u32 %v4970_v20, 16  ;;  %v752_v41 = vshrl.u32 %v4977_v28, 16  ;;  %6548 = vst [vmem:[#allocation12_spill] sm:$0xff] %v5019_v24 }
  0x2a   : > { %6544 = vst [vmem:[#allocation8_spill] sm:$0xff] %v4979_v29  ;;  %4335 = vmatmul.mubr.msk.bf16.vlgmr.msra.gmra.mxu0 %vm897_vm3, %v4979_v29  ;;  %v755_v43 = vshll.u32 %v4977_v28, 16  ;;  %v745_v44 = vrot.slane %v744_v34, 4  ;;  %v518_v45 = vor.u32 %v517_v35, %v514_v33  ;;  %v523_v46 = vrot.slane %v521_v36, 5  ;;  %v5026_v34 = vld [vmem:[%s4873_s27 + $0xa0] sm:$0xf] }
  0x2b   : > { %v527_v47 = vrot.slane %v525_v37, 4  ;;  %v740_v50 = vsel %vm4916_vm4, %v735_v38, %v739_v23  ;;  %v533_v51 = vrot.slane %v531_v39, 5  ;;  %v754_v52 = vrot.slane %v752_v41, 4  ;;  %6549 = vst [vmem:[#allocation13_spill] sm:$0xff] %v5026_v34  ;;  %v5035_v39 = vld [vmem:[%s6483_s1] sm:$0x3] }
  0x2c   : > { %v757_v53 = vrot.slane %v755_v43, 5  ;;  %v750_v55 = vsel %vm4916_vm4, %v745_v44, %v749_v32  ;;  %v519_v56 = vrot.slane %v518_v45, 4  ;;  %v761_v60 = vshll.u32 %v4987_v40, 16  ;;  %4702 = vmatprep.subr.msk.bf16.mxu1 %vm946_vm0, %v5035_v39  ;;  %v5192_v29 = vld [vmem:[%s4873_s27 + $0x5c] sm:$0x1] }
  0x2d   : > { %v528_v59 = vor.u32 %v527_v47, %v523_v46  ;;  %v5002_v63 = vcombine.low %v740_v50, %v750_v55  ;;  %v765_v6 = vshrl.u32 %v4987_v40, 16  ;;  %v771_v7 = vshll.u32 %v4992_v48, 16  ;;  %v5044_v50 = vld [vmem:[%s4873_s27 + $0xa4] sm:$0x1]  ;;  %v5236_v28 = vld [vmem:[%s4873_s27 + $0x70] sm:$0xf] }
  0x2e   : > { %v758_v3 = vor.u32 %v757_v53, %v754_v52  ;;  %v524_v9 = vsel %vm4916_vm4, %v519_v56, %v523_v46  ;;  %v763_v11 = vrot.slane %v761_v60, 5  ;;  %v536_v17 = vshrl.u32 %v4997_v54, 16  ;;  %6551 = vst [vmem:[#allocation15_spill] sm:$0xff] %v5044_v50  ;;  %v5050_v60 = vld [vmem:[%s4873_s27 + $0x30] sm:$0xf] }
  0x2f   : > { %6547 = vst [vmem:[#allocation11_spill] sm:$0xff] %v5002_v63  ;;  %v529_v10 = vrot.slane %v528_v59, 4  ;;  %4355 = vmatmul.mubr.msk.bf16.vlgmr.msra.gmra.mxu1 %vm897_vm3, %v5002_v63  ;;  %v767_v21 = vrot.slane %v765_v6, 4  ;;  %v773_v22 = vrot.slane %v771_v7, 5  ;;  %v539_v23 = vshll.u32 %v4997_v54, 16 }
  0x30   : > { %v759_v19 = vrot.slane %v758_v3, 4  ;;  %v538_v30 = vrot.slane %v536_v17, 4  ;;  %v545_v32 = vshll.u32 %v5007_v8, 16  ;;  %v549_v33 = vshrl.u32 %v5007_v8, 16 }
  0x31   : > { %v534_v27 = vsel %vm4916_vm4, %v529_v10, %v533_v51  ;;  %v768_v37 = vor.u32 %v767_v21, %v763_v11  ;;  %v541_v38 = vrot.slane %v539_v23, 5  ;;  %v555_v44 = vshll.u32 %v5012_v14, 16  ;;  %v5055_v10 = vld [vmem:[%s4873_s27 + $0x34] sm:$0xf] }
  0x32   : > { %v5028_v35 = vcombine.low %v524_v9, %v534_v27  ;;  %v764_v36 = vsel %vm4916_vm4, %v759_v19, %v763_v11  ;;  %v547_v41 = vrot.slane %v545_v32, 5  ;;  %v551_v43 = vrot.slane %v549_v33, 4 }
  0x33   : > { %v776_v45 = vshrl.u32 %v5019_v24, 16  ;;  %v769_v46 = vrot.slane %v768_v37, 4  ;;  %v542_v47 = vor.u32 %v541_v38, %v538_v30  ;;  %v779_v51 = vshll.u32 %v5019_v24, 16  ;;  %v5063_v30 = vld [vmem:[%s4873_s27 + $0x38] sm:$0x1] }
  0x34   : > { %6550 = vst [vmem:[#allocation14_spill] sm:$0xff] %v5028_v35  ;;  %4338 = vmatprep.mubr.msk.bf16.mxu0 %vm897_vm3, %v5028_v35  ;;  %v785_v52 = vshll.u32 %v5026_v34, 16  ;;  %v552_v53 = vor.u32 %v551_v43, %v547_v41  ;;  %v557_v55 = vrot.slane %v555_v44, 5  ;;  %v789_v59 = vshrl.u32 %v5026_v34, 16  ;;  %v5073_v43 = vld [vmem:[%s4873_s27 + $0xa8] sm:$0xf] }
  0x35   : > { %v778_v56 = vrot.slane %v776_v45, 4  ;;  %v774_v3 = vsel %vm4916_vm4, %v769_v46, %v773_v22  ;;  %v543_v6 = vrot.slane %v542_v47, 4  ;;  %v781_v7 = vrot.slane %v779_v51, 5  ;;  %v5078_v47 = vld [vmem:[%s4873_s27 + $0xac] sm:$0xf] }
  0x36   : > { %v787_v9 = vrot.slane %v785_v52, 5  ;;  %v5057_v11 = vcombine.low %v764_v36, %v774_v3  ;;  %v553_v17 = vrot.slane %v552_v53, 4  ;;  %v791_v19 = vrot.slane %v789_v59, 4  ;;  %v5087_v3 = vld [vmem:[%s4873_s27 + $0xb0] sm:$0x1] }
  0x37   : > { %v795_v21 = vshll.u32 %v5044_v50, 16  ;;  %v548_v23 = vsel %vm4916_vm4, %v543_v6, %v547_v41  ;;  %v782_v27 = vor.u32 %v781_v7, %v778_v56  ;;  %v560_v22 = vshrl.u32 %v5050_v60, 16 }
  0x38   : > { %6552 = vst [vmem:[#allocation16_spill] sm:$0xff] %v5057_v11  ;;  %v563_v32 = vshll.u32 %v5050_v60, 16  ;;  %4358 = vmatprep.mubr.msk.bf16.mxu1 %vm897_vm3, %v5057_v11  ;;  %v558_v33 = vsel %vm4916_vm4, %v553_v17, %v557_v55  ;;  %v792_v36 = vor.u32 %v791_v19, %v787_v9  ;;  %v569_v38 = vshll.u32 %v5055_v10, 16  ;;  %v5094_v17 = vld [vmem:[%s6483_s1 + $0x4] sm:$0x3] }
  0x39   : > { %v797_v37 = vrot.slane %v795_v21, 5  ;;  %v5075_v41 = vcombine.low %v548_v23, %v558_v33  ;;  %v783_v44 = vrot.slane %v782_v27, 4  ;;  %v562_v45 = vrot.slane %v560_v22, 4  ;;  %v5100_v27 = vld [vmem:[%s4873_s27 + $0x3c] sm:$0xf]  ;;  %4703 = vmatprep.subr.msk.bf16.mxu0 %vm946_vm0, %v5094_v17 }
  0x3a   : > { %v565_v46 = vrot.slane %v563_v32, 5  ;;  %v793_v51 = vrot.slane %v792_v36, 4  ;;  %v571_v52 = vrot.slane %v569_v38, 5  ;;  %v573_v53 = vshrl.u32 %v5055_v10, 16  ;;  %v5107_v38 = vld [vmem:[%s4873_s27 + $0x40] sm:$0xf] }
  0x3b   : > { %6553 = vst [vmem:[#allocation17_spill] sm:$0xff] %v5075_v41  ;;  %v579_v55 = vshll.u32 %v5063_v30, 16  ;;  %4339 = vmatmul.mubr.msk.bf16.gmra.mxu0 %vm897_vm3, %v5075_v41  ;;  %v788_v56 = vsel %vm4916_vm4, %v783_v44, %v787_v9  ;;  %v800_v6 = vshrl.u32 %v5073_v43, 16  ;;  %v803_v7 = vshll.u32 %v5073_v43, 16 }
  0x3c   : > { %v566_v59 = vor.u32 %v565_v46, %v562_v45  ;;  %v798_v19 = vsel %vm4916_vm4, %v793_v51, %v797_v37  ;;  %v575_v21 = vrot.slane %v573_v53, 4  ;;  %v809_v9 = vshll.u32 %v5078_v47, 16 }
  0x3d   : > { %v581_v23 = vrot.slane %v579_v55, 5  ;;  %v5104_v22 = vcombine.low %v788_v56, %v798_v19  ;;  %v802_v33 = vrot.slane %v800_v6, 4  ;;  %v805_v36 = vrot.slane %v803_v7, 5  ;;  %v5116_v55 = vld [vmem:[%s4873_s27 + $0x44] sm:$0x1] }
  0x3e   : > { %v567_v32 = vrot.slane %v566_v59, 4  ;;  %v576_v44 = vor.u32 %v575_v21, %v571_v52  ;;  %v811_v45 = vrot.slane %v809_v9, 5  ;;  %v813_v37 = vshrl.u32 %v5078_v47, 16 }
  0x3f   : > { %6554 = vst [vmem:[#allocation18_spill] sm:$0xff] %v5104_v22  ;;  %v819_v46 = vshll.u32 %v5087_v3, 16  ;;  %4359 = vmatmul.mubr.msk.bf16.gmra.mxu1 %vm897_vm3, %v5104_v22  ;;  %v806_v53 = vor.u32 %v805_v36, %v802_v33  ;;  %v584_v56 = vshrl.u32 %v5100_v27, 16  ;;  %v587_v59 = vshll.u32 %v5100_v27, 16 }
  0x40   : > { %v572_v51 = vsel %vm4916_vm4, %v567_v32, %v571_v52  ;;  %v577_v6 = vrot.slane %v576_v44, 4  ;;  %v815_v7 = vrot.slane %v813_v37, 4  ;;  %v593_v21 = vshll.u32 %v5107_v38, 16  ;;  %v5123_v52 = vld [vmem:[%s4873_s27 + $0xb4] sm:$0xf] }
  0x41   : > { %v821_v19 = vrot.slane %v819_v46, 5  ;;  %v807_v9 = vrot.slane %v806_v53, 4  ;;  %v586_v18 = vrot.slane %v584_v56, 4  ;;  %v589_v61 = vrot.slane %v587_v59, 5  ;;  %v5129_v44 = vld [vmem:[%s4873_s27 + $0xb8] sm:$0xf] }
  0x42   : > { %v597_v58 = vshrl.u32 %v5107_v38, 16  ;;  %v582_v32 = vsel %vm4916_vm4, %v577_v6, %v581_v23  ;;  %v816_v33 = vor.u32 %v815_v7, %v811_v45  ;;  %v595_v36 = vrot.slane %v593_v21, 5  ;;  %v5136_v59 = vld [vmem:[%s4873_s27 + $0xbc] sm:$0x1] }
  0x43   : > { %v603_v22 = vshll.u32 %v5116_v55, 16  ;;  %v5131_v37 = vcombine.low %v572_v51, %v582_v32  ;;  %v812_v46 = vsel %vm4916_vm4, %v807_v9, %v811_v45  ;;  %v590_v53 = vor.u32 %v589_v61, %v586_v18  ;;  %v5145_v18 = vld [vmem:[%s4873_s27 + $0x48] sm:$0xf]  ;;  %v5151_v32 = vld [vmem:[%s4873_s27 + $0x4c] sm:$0xf] }
  0x44   : > { %v599_v56 = vrot.slane %v597_v58, 4  ;;  %v817_v11 = vrot.slane %v816_v33, 4  ;;  %v824_v23 = vshrl.u32 %v5123_v52, 16  ;;  %v827_v6 = vshll.u32 %v5123_v52, 16 }
  0x45   : > { %6555 = vst [vmem:[#allocation19_spill] sm:$0xff] %v5131_v37  ;;  %v605_v63 = vrot.slane %v603_v22, 5  ;;  %4342 = vmatprep.mubr.msk.bf16.mxu0 %vm897_vm3, %v5131_v37  ;;  %v591_v7 = vrot.slane %v590_v53, 4  ;;  %v833_v21 = vshll.u32 %v5129_v44, 16  ;;  %v837_v45 = vshrl.u32 %v5129_v44, 16 }
  0x46   : > { %v600_v51 = vor.u32 %v599_v56, %v595_v36  ;;  %v822_v58 = vsel %vm4916_vm4, %v817_v11, %v821_v19  ;;  %v826_v61 = vrot.slane %v824_v23, 4  ;;  %v829_v22 = vrot.slane %v827_v6, 5  ;;  %v5160_v37 = vld [vmem:[%s6483_s1 + $0x6] sm:$0x3] }
  0x47   : > { %v843_v9 = vshll.u32 %v5136_v59, 16  ;;  %v5153_v33 = vcombine.low %v812_v46, %v822_v58  ;;  %v596_v53 = vsel %vm4916_vm4, %v591_v7, %v595_v36  ;;  %v835_v1 = vrot.slane %v833_v21, 5  ;;  %v5165_v46 = vld [vmem:[%s4873_s27 + $0x50] sm:$0x1] }
  0x48   : > { %v601_v56 = vrot.slane %v600_v51, 4  ;;  %v830_v11 = vor.u32 %v829_v22, %v826_v61  ;;  %v839_v19 = vrot.slane %v837_v45, 4  ;;  %v1240_v6 = vsel %vm946_vm0, %v5035_v39, 0  ;;  %v5175_v45 = vld [vmem:[%s4873_s27 + $0x54] sm:$0xf] }
  0x49   : > { %6556 = vst [vmem:[#allocation20_spill] sm:$0xff] %v5153_v33  ;;  %v845_v23 = vrot.slane %v843_v9, 5  ;;  %4362 = vmatprep.mubr.msk.bf16.mxu1 %vm897_vm3, %v5153_v33  ;;  %4367 = vmatpush3.bf16.msra.mxu1 %v1240_v6  ;;  %v608_v7 = vshrl.u32 %v5145_v18, 16  ;;  %v611_v51 = vshll.u32 %v5145_v18, 16  ;;  %v617_v21 = vshll.u32 %v5151_v32, 16 }
  0x4a   : > { %v606_v36 = vsel %vm4916_vm4, %v601_v56, %v605_v63  ;;  %v831_v39 = vrot.slane %v830_v11, 4  ;;  %v840_v61 = vor.u32 %v839_v19, %v835_v1  ;;  %v621_v22 = vshrl.u32 %v5151_v32, 16  ;;  %v5181_v9 = vld [vmem:[%s4873_s27 + $0x58] sm:$0xf]  ;;  %4704 = vmatprep.subr.msk.bf16.mxu1 %vm946_vm0, %v5160_v37 }
  0x4b   : > { %v5177_v58 = vcombine.low %v596_v53, %v606_v36  ;;  %v610_v63 = vrot.slane %v608_v7, 4  ;;  %v613_v56 = vrot.slane %v611_v51, 5  ;;  %v619_v6 = vrot.slane %v617_v21, 5 }
  0x4c   : > { %v627_v33 = vshll.u32 %v5165_v46, 16  ;;  %v836_v53 = vsel %vm4916_vm4, %v831_v39, %v835_v1  ;;  %v841_v11 = vrot.slane %v840_v61, 4  ;;  %v623_v19 = vrot.slane %v621_v22, 4  ;;  %v5200_v39 = vld [vmem:[%s4873_s27 + $0x60] sm:$0xf] }
  0x4d   : > { %6557 = vst [vmem:[#allocation21_spill] sm:$0xff] %v5177_v58  ;;  %4343 = vmatmul.mubr.msk.bf16.gmra.mxu0 %vm897_vm3, %v5177_v58  ;;  %v632_v36 = vshrl.u32 %v5175_v45, 16  ;;  %v614_v41 = vor.u32 %v613_v56, %v610_v63  ;;  %v635_v7 = vshll.u32 %v5175_v45, 16  ;;  %v641_v51 = vshll.u32 %v5181_v9, 16  ;;  %v5205_v56 = vld [vmem:[%s4873_s27 + $0x64] sm:$0xf] }
  0x4e   : > { %v629_v35 = vrot.slane %v627_v33, 5  ;;  %v846_v21 = vsel %vm4916_vm4, %v841_v11, %v845_v23  ;;  %v624_v58 = vor.u32 %v623_v19, %v619_v6  ;;  %v645_v1 = vshrl.u32 %v5181_v9, 16  ;;  %v5217_v11 = vld [vmem:[%s4873_s27 + $0x68] sm:$0x1] }
  0x4f   : > { %v634_v50 = vrot.slane %v632_v36, 4  ;;  %v5202_v61 = vcombine.low %v836_v53, %v846_v21  ;;  %v615_v22 = vrot.slane %v614_v41, 4  ;;  %v637_v33 = vrot.slane %v635_v7, 5 }
  0x50   : > { %v643_v63 = vrot.slane %v641_v51, 5  ;;  %v625_v48 = vrot.slane %v624_v58, 4  ;;  %v647_v62 = vrot.slane %v645_v1, 4  ;;  %v651_v24 = vshll.u32 %v5192_v29, 16 }
  0x51   : > { %6558 = vst [vmem:[#allocation22_spill] sm:$0xff] %v5202_v61  ;;  %v5210_v23 = vcombine.low %v4912_v25, %v4921_v31  ;;  %4363 = vmatmul.mubr.msk.bf16.gmra.mxu1 %vm897_vm3, %v5202_v61  ;;  %v620_v53 = vsel %vm4916_vm4, %v615_v22, %v619_v6  ;;  %v638_v41 = vor.u32 %v637_v33, %v634_v50  ;;  %v656_v19 = vshrl.u32 %v5200_v39, 16  ;;  %v5229_v6 = vld [vmem:[%s4873_s27 + $0x6c] sm:$0xf] }
  0x52   : > { %v659_v58 = vshll.u32 %v5200_v39, 16  ;;  %v630_v36 = vsel %vm4916_vm4, %v625_v48, %v629_v35  ;;  %v6559_v7 = vcombine.low %v4880_v2, %v4886_v4  ;;  %v648_v51 = vor.u32 %v647_v62, %v643_v63 }
  0x53   : > { %v653_v21 = vrot.slane %v651_v24, 5  ;;  %v665_v50 = vshll.u32 %v5205_v56, 16  ;;  %v5231_v1 = vcombine.low %v620_v53, %v630_v36  ;;  %v639_v22 = vrot.slane %v638_v41, 4  ;;  %v5247_v41 = vld [vmem:[%s4873_s27 + $0x74] sm:$0x1] }
  0x54   : > { %4368 = vmatprep.mubr.msk.bf16.mxu1 %vm897_vm3, %v6559_v7  ;;  %v658_v33 = vrot.slane %v656_v19, 4  ;;  %v661_v61 = vrot.slane %v659_v58, 5  ;;  %v649_v34 = vrot.slane %v648_v51, 4  ;;  %v669_v48 = vshrl.u32 %v5205_v56, 16 }
  0x55   : > { %6560 = vst [vmem:[#allocation23_spill] sm:$0xff] %v5231_v1  ;;  %v667_v16 = vrot.slane %v665_v50, 5  ;;  %v675_v35 = vshll.u32 %v5217_v11, 16  ;;  %4346 = vmatprep.mubr.msk.bf16.mxu0 %vm897_vm3, %v5231_v1  ;;  %v644_v62 = vsel %vm4916_vm4, %v639_v22, %v643_v63  ;;  %v5244_v53 = vcombine.low %v4954_v0, %v4962_v13 }
  0x56   : > { %v662_v24 = vor.u32 %v661_v61, %v658_v33  ;;  %v680_v19 = vshrl.u32 %v5229_v6, 16  ;;  %v654_v58 = vsel %vm4916_vm4, %v649_v34, %v653_v21  ;;  %v671_v36 = vrot.slane %v669_v48, 4  ;;  %v5261_v34 = vld [vmem:[%s6483_s1 + $0x8] sm:$0x3] }
  0x57   : > { %v677_v7 = vrot.slane %v675_v35, 5  ;;  %v683_v51 = vshll.u32 %v5229_v6, 16  ;;  %v5253_v50 = vcombine.low %v644_v62, %v654_v58  ;;  %v689_v61 = vshll.u32 %v5236_v28, 16 }
  0x58   : > { %v663_v1 = vrot.slane %v662_v24, 4  ;;  %v682_v63 = vrot.slane %v680_v19, 4  ;;  %v672_v22 = vor.u32 %v671_v36, %v667_v16  ;;  %v693_v40 = vshrl.u32 %v5236_v28, 16 }
  0x59   : > { %v685_v33 = vrot.slane %v683_v51, 5  ;;  %v699_v49 = vshll.u32 %v5247_v41, 16  ;;  %v1434_v21 = vrot.slane %v4928_v42, 5  ;;  %4347 = vmatmul.mubr.msk.bf16.gmra.mxu0 %vm897_vm3, %v5253_v50  ;;  %4369 = vmatmul.mubr.msk.bf16.vlgmr.msra.gmra.mxu1 %vm897_vm3, %v5210_v23  ;;  %v691_v35 = vrot.slane %v689_v61, 5 }
  0x5a   : > { %v668_v48 = vsel %vm4916_vm4, %v663_v1, %v667_v16  ;;  %v1633_v62 = vsel %vm946_vm0, %v5094_v17, 0  ;;  %v673_v24 = vrot.slane %v672_v22, 4  ;;  %4372 = vmatprep.mubr.msk.bf16.mxu1 %vm897_vm3, %v5244_v53  ;;  %v695_v58 = vrot.slane %v693_v40, 4 }
  0x5b   : > { %v686_v19 = vor.u32 %v685_v33, %v682_v63  ;;  %v5276_v42 = vcombine.low %v4997_v54, %v5007_v8  ;;  %4401 = vmatpush3.bf16.msra.mxu0 %v1633_v62  ;;  %v701_v36 = vrot.slane %v699_v49, 5  ;;  %vm1420_vm6 = vcmask 1046532  }
  0x5c   : > { %v3884_v16 = vrot.slane %v4880_v2, 9  ;;  %4705 = vmatprep.subr.msk.bf16.mxu0 %vm946_vm0, %v5261_v34  ;;  %v678_v17 = vsel %vm4916_vm4, %v673_v24, %v677_v7  ;;  %v696_v51 = vor.u32 %v695_v58, %v691_v35  ;;  %vm5283_vm7 = vmor %vm1419_vm5, %vm1420_vm6  ;;  %v6561_v40 = vmov 0 }
  0x5d   : > { %v687_v1 = vrot.slane %v686_v19, 4  ;;  %v6562_v40 = vsel %vm5283_vm7, 4294967295, %v6561_v40  ;;  %v1424_v63 = vrot.slane %v4886_v4, 5  ;;  %v5288_v61 = vcombine.low %v668_v48, %v678_v17 }
  0x5e   : > { %6563 = vst [vmem:[#allocation24_spill] sm:$0xff] %v6562_v40  ;;  %v5292_v49 = vcombine.low %v5050_v60, %v5055_v10  ;;  %v3885_v2 = vrot.slane %v4912_v25, 9  ;;  %v6564_v22 = vrot.slane %v4921_v31, 5  ;;  %v697_v62 = vrot.slane %v696_v51, 4 }
  0x5f   : > { %v692_v7 = vsel %vm4916_vm4, %v687_v1, %v691_v35  ;;  %v1425_v24 = vsel %vm5283_vm7, %v3884_v16, %v1424_v63  ;;  %v1426_v19 = vrot.slane %v1424_v63, 4  ;;  %4350 = vmatprep.mubr.msk.bf16.mxu0 %vm897_vm3, %v5288_v61  ;;  %v6566_v35 = vrot.slane %v4889_v5, 5 }
  0x60   : > { %v1433_v33 = vrot.slane %v6564_v22, 4  ;;  %v6565_v4 = vmov %v6564_v22  ;;  %v702_v58 = vsel %vm4916_vm4, %v697_v62, %v701_v36  ;;  %v1438_v1 = vrot.slane %v4962_v13, 5 }
  0x61   : > { %v1432_v48 = vsel %vm5283_vm7, %v3885_v2, %v6565_v4  ;;  %v1428_v16 = vsel %vm5283_vm7, %v1426_v19, %v6566_v35  ;;  %v5318_v51 = vcombine.low %v692_v7, %v702_v58  ;;  %4373 = vmatmul.mubr.msk.bf16.gmra.mxu1 %vm897_vm3, %v5276_v42  ;;  %v1441_v63 = vrot.slane %v4970_v20, 5 }
  0x62   : > { %v1435_v25 = vsel %vm5283_vm7, %v1433_v33, %v1434_v21  ;;  %v3901_v31 = vcombine.low %v1425_v24, %v1428_v16  ;;  %v3886_v21 = vrot.slane %v4954_v0, 9  ;;  %4376 = vmatprep.mubr.msk.bf16.mxu1 %vm897_vm3, %v5292_v49  ;;  %v1440_v5 = vrot.slane %v1438_v1, 4 }
  0x63   : > { %v5315_v17 = vcombine.low %v1432_v48, %v1435_v25  ;;  %4351 = vmatmul.mubr.msk.bf16.gmra.mxu0 %vm897_vm3, %v5318_v51  ;;  %v1445_v13 = vrot.slane %v5007_v8, 5  ;;  %v5332_v36 = vcombine.low %v5100_v27, %v5107_v38  ;;  %v1452_v2 = vrot.slane %v5055_v10, 5 }
  0x64   : > { %4402 = vmatprep.mubr.msk.bf16.mxu0 %vm897_vm3, %v3901_v31  ;;  %v1439_v0 = vsel %vm5283_vm7, %v3886_v21, %v1438_v1  ;;  %v1442_v20 = vsel %vm5283_vm7, %v1440_v5, %v1441_v63  ;;  %v5341_v22 = vcombine.low %v5145_v18, %v5151_v32  ;;  %v3887_v8 = vrot.slane %v4997_v54, 9  ;;  %v5387_v31 = vld [vmem:[%s6483_s1 + $0xc] sm:$0x3] }
  0x65   : > { %v5343_v33 = vcombine.low %v1439_v0, %v1442_v20  ;;  %v1447_v7 = vrot.slane %v1445_v13, 4  ;;  %v1448_v62 = vrot.slane %v5012_v14, 5  ;;  %v3888_v24 = vrot.slane %v5050_v60, 9 }
  0x66   : > { %v1454_v19 = vrot.slane %v1452_v2, 4  ;;  %v1455_v4 = vrot.slane %v5063_v30, 5  ;;  %v1459_v10 = vrot.slane %v5107_v38, 5  ;;  %v5360_v54 = vcombine.low %v5175_v45, %v5181_v9  ;;  %v5369_v30 = vld [vmem:[%s6483_s1 + $0xa] sm:$0x3] }
  0x67   : > { %v1446_v14 = vsel %vm5283_vm7, %v3887_v8, %v1445_v13  ;;  %v1449_v60 = vsel %vm5283_vm7, %v1447_v7, %v1448_v62  ;;  %v1453_v38 = vsel %vm5283_vm7, %v3888_v24, %v1452_v2  ;;  %v1466_v25 = vrot.slane %v5151_v32, 5 }
  0x68   : > { %v1456_v48 = vsel %vm5283_vm7, %v1454_v19, %v1455_v4  ;;  %v1839_v58 = vsel %vm946_vm0, %v5160_v37, 0  ;;  %v5380_v35 = vcombine.low %v5200_v39, %v5205_v56  ;;  %v3889_v16 = vrot.slane %v5100_v27, 9 }
  0x69   : > { %4377 = vmatmul.mubr.msk.bf16.gmra.mxu1 %vm897_vm3, %v5332_v36  ;;  %v1462_v1 = vrot.slane %v5116_v55, 5  ;;  %v5389_v21 = vcombine.low %v1446_v14, %v1449_v60  ;;  %v1461_v32 = vrot.slane %v1459_v10, 4  ;;  %v2067_v37 = vsel %vm946_vm0, %v5261_v34, 0 }
  0x6a   : > { %4380 = vmatprep.mubr.msk.bf16.mxu1 %vm897_vm3, %v5341_v22  ;;  %4435 = vmatpush3.bf16.msra.mxu1 %v1839_v58  ;;  %v5395_v63 = vcombine.low %v5073_v43, %v5078_v47  ;;  %v5399_v27 = vcombine.low %v1453_v38, %v1456_v48  ;;  %v5403_v55 = vcombine.low %v5123_v52, %v5129_v44  ;;  %v3890_v5 = vrot.slane %v5145_v18, 9 }
  0x6b   : > { %4403 = vmatmul.mubr.msk.bf16.vlgmr.msra.gmra.mxu0 %vm897_vm3, %v5315_v17  ;;  %4706 = vmatprep.subr.msk.bf16.mxu1 %vm946_vm0, %v5369_v30  ;;  %v1468_v34 = vrot.slane %v1466_v25, 4  ;;  %v1469_v13 = vrot.slane %v5165_v46, 5  ;;  %v1460_v0 = vsel %vm5283_vm7, %v3889_v16, %v1459_v10  ;;  %v1463_v20 = vsel %vm5283_vm7, %v1461_v32, %v1462_v1 }
  0x6c   : > { %4406 = vmatprep.mubr.msk.bf16.mxu0 %vm897_vm3, %v5343_v33  ;;  %4469 = vmatpush3.bf16.msra.mxu0 %v2067_v37  ;;  %v1473_v18 = vrot.slane %v5181_v9, 5  ;;  %v1480_v46 = vrot.slane %v5205_v56, 5  ;;  %v5425_v2 = vcombine.low %v5229_v6, %v5236_v28  ;;  %v5429_v8 = vcombine.low %v4897_v12, %v4900_v15 }
  0x6d   : > { %4707 = vmatprep.subr.msk.bf16.mxu0 %vm946_vm0, %v5387_v31  ;;  %v1467_v7 = vsel %vm5283_vm7, %v3890_v5, %v1466_v25  ;;  %v1470_v62 = vsel %vm5283_vm7, %v1468_v34, %v1469_v13  ;;  %v5435_v9 = vcombine.low %v1460_v0, %v1463_v20  ;;  %v3891_v24 = vrot.slane %v5175_v45, 9  ;;  %v6568_v0 = vld [vmem:[#allocation9_spill] sm:$0xff]  ;;  %v6569_v20 = vld [vmem:[#allocation7_spill] sm:$0xff] }
  0x6e   : > { %v1476_v56 = vrot.slane %v5192_v29, 5  ;;  %v3898_v19 = vrot.slane %v5073_v43, 9  ;;  %v1475_v4 = vrot.slane %v1473_v18, 4  ;;  %v3892_v10 = vrot.slane %v5200_v39, 9 }
  0x6f   : > { %v1522_v14 = vrot.slane %v5078_v47, 5  ;;  %v1525_v60 = vrot.slane %v5087_v3, 5  ;;  %v5443_v38 = vcombine.low %v1467_v7, %v1470_v62  ;;  %v1482_v48 = vrot.slane %v1480_v46, 4  ;;  %v6567_v3 = vld [vmem:[#allocation4_spill] sm:$0xff] }
  0x70   : > { %v1483_v25 = vrot.slane %v5217_v11, 5  ;;  %v3899_v58 = vrot.slane %v5123_v52, 9  ;;  %v1529_v45 = vrot.slane %v5129_v44, 5  ;;  %v1532_v47 = vrot.slane %v5136_v59, 5 }
  0x71   : > { %4381 = vmatmul.mubr.msk.bf16.gmra.mxu1 %vm897_vm3, %v5360_v54  ;;  %v1523_v29 = vsel %vm5283_vm7, %v3898_v19, %v1522_v14  ;;  %v1524_v43 = vrot.slane %v1522_v14, 4  ;;  %v5459_v52 = vcombine.low %v6567_v3, %v4941_v57  ;;  %v1474_v44 = vsel %vm5283_vm7, %v3891_v24, %v1473_v18  ;;  %v6571_v19 = vld [vmem:[#allocation3_spill] sm:$0xff] }
  0x72   : > { %4384 = vmatprep.mubr.msk.bf16.mxu1 %vm897_vm3, %v5380_v35  ;;  %v1530_v11 = vsel %vm5283_vm7, %v3899_v58, %v1529_v45  ;;  %v1531_v16 = vrot.slane %v1529_v45, 4  ;;  %v1477_v59 = vsel %vm5283_vm7, %v1475_v4, %v1476_v56  ;;  %v1487_v1 = vrot.slane %v5236_v28, 5 }
  0x73   : > { %4407 = vmatmul.mubr.msk.bf16.gmra.mxu0 %vm897_vm3, %v5389_v21  ;;  %v1526_v39 = vsel %vm5283_vm7, %v1524_v43, %v1525_v60  ;;  %v1481_v37 = vsel %vm5283_vm7, %v3892_v10, %v1480_v46  ;;  %v1484_v5 = vsel %vm5283_vm7, %v1482_v48, %v1483_v25  ;;  %v1494_v34 = vrot.slane %v4900_v15, 5  ;;  %v6572_v60 = vld [vmem:[#allocation13_spill] sm:$0xff] }
  0x74   : > { %4410 = vmatprep.mubr.msk.bf16.mxu0 %vm897_vm3, %v5399_v27  ;;  %v5472_v32 = vcombine.low %v1523_v29, %v1526_v39  ;;  %v1533_v13 = vsel %vm5283_vm7, %v1531_v16, %v1532_v47  ;;  %v5483_v18 = vcombine.low %v6569_v20, %v6568_v0  ;;  %v5487_v28 = vcombine.low %v1474_v44, %v1477_v59  ;;  %v6575_v59 = vld [vmem:[#allocation10_spill] sm:$0xff] }
  0x75   : > { %v5485_v7 = vcombine.low %v1530_v11, %v1533_v13  ;;  %v5489_v62 = vcombine.low %v1481_v37, %v1484_v5  ;;  %v3893_v46 = vrot.slane %v5229_v6, 9  ;;  %v1489_v24 = vrot.slane %v1487_v1, 4 }
  0x76   : > { %v1490_v56 = vrot.slane %v5247_v41, 5  ;;  %v1497_v15 = vrot.slane %v6571_v19, 5  ;;  %v3894_v4 = vrot.slane %v4897_v12, 9  ;;  %v1496_v10 = vrot.slane %v1494_v34, 4  ;;  %v6573_v12 = vld [vmem:[#allocation12_spill] sm:$0xff] }
  0x77   : > { %6570 = vst [vmem:[#allocation4_spill] sm:$0xff] %v5485_v7  ;;  %v1488_v6 = vsel %vm5283_vm7, %v3893_v46, %v1487_v1  ;;  %v1501_v14 = vrot.slane %v4941_v57, 5  ;;  %v5510_v48 = vcombine.low %v6573_v12, %v6572_v60  ;;  %v1508_v29 = vrot.slane %v6568_v0, 5  ;;  %v6574_v57 = vld [vmem:[#allocation5_spill] sm:$0xff] }
  0x78   : > { %v1491_v41 = vsel %vm5283_vm7, %v1489_v24, %v1490_v56  ;;  %v1495_v25 = vsel %vm5283_vm7, %v3894_v4, %v1494_v34  ;;  %v1498_v58 = vsel %vm5283_vm7, %v1496_v10, %v1497_v15  ;;  %v3895_v47 = vrot.slane %v6567_v3, 9  ;;  %v6576_v56 = vld [vmem:[#allocation15_spill] sm:$0xff] }
  0x79   : > { %4385 = vmatmul.mubr.msk.bf16.gmra.mxu1 %vm897_vm3, %v5425_v2  ;;  %v5517_v43 = vcombine.low %v1488_v6, %v1491_v41  ;;  %v5519_v45 = vcombine.low %v1495_v25, %v1498_v58  ;;  %v1503_v39 = vrot.slane %v1501_v14, 4  ;;  %v1504_v11 = vrot.slane %v6574_v57, 5  ;;  %v6581_v25 = vld [vmem:[#allocation21_spill] sm:$0xff]  ;;  %v6582_v58 = vld [vmem:[#allocation23_spill] sm:$0xff] }
  0x7a   : > { %4388 = vmatprep.mubr.msk.bf16.mxu1 %vm897_vm3, %v5429_v8  ;;  %v3896_v16 = vrot.slane %v6569_v20, 9  ;;  %v1510_v44 = vrot.slane %v1508_v29, 4  ;;  %v1511_v1 = vrot.slane %v6575_v59, 5  ;;  %v1502_v3 = vsel %vm5283_vm7, %v3895_v47, %v1501_v14  ;;  %v4025_v14 = vld [vmem:[%s6483_s1 + $0x10] sm:$0x3]  ;;  %v6584_v57 = vld [vmem:[#allocation11_spill] sm:$0xff] }
  0x7b   : > { %4411 = vmatmul.mubr.msk.bf16.gmra.mxu0 %vm897_vm3, %v5435_v9  ;;  %v1505_v37 = vsel %vm5283_vm7, %v1503_v39, %v1504_v11  ;;  %v1515_v5 = vrot.slane %v6572_v60, 5  ;;  %v3897_v46 = vrot.slane %v6573_v12, 9  ;;  %v1518_v19 = vrot.slane %v6576_v56, 5  ;;  %v6578_v60 = vld [vmem:[#allocation14_spill] sm:$0xff]  ;;  %v6579_v12 = vld [vmem:[#allocation17_spill] sm:$0xff] }
  0x7c   : > { %4414 = vmatprep.mubr.msk.bf16.mxu0 %vm897_vm3, %v5443_v38  ;;  %v1509_v34 = vsel %vm5283_vm7, %v3896_v16, %v1508_v29  ;;  %v1512_v13 = vsel %vm5283_vm7, %v1510_v44, %v1511_v1  ;;  %v5542_v0 = vcombine.low %v1502_v3, %v1505_v37  ;;  %v2279_v6 = vsel %vm946_vm0, %v5369_v30, 0  ;;  %v6577_v30 = vld [vmem:[#allocation8_spill] sm:$0xff]  ;;  %v5627_v29 = vld [vmem:[%s4873_s27 + $0xc0] sm:$0xf]  ;;  %v5630_v47 = vld [vmem:[%s4873_s27 + $0xc4] sm:$0xf] }
  0x7d   : > { %v5544_v20 = vcombine.low %v1509_v34, %v1512_v13  ;;  %v1517_v24 = vrot.slane %v1515_v5, 4  ;;  %v1516_v15 = vsel %vm5283_vm7, %v3897_v46, %v1515_v5  ;;  %v2485_v41 = vsel %vm946_vm0, %v5387_v31, 0  ;;  %v6580_v31 = vld [vmem:[#allocation19_spill] sm:$0xff]  ;;  %v6583_v39 = vld [vmem:[#allocation6_spill] sm:$0xff]  ;;  %v6585_v46 = vld [vmem:[#allocation16_spill] sm:$0xff] }
  0x7e   : > { %v2035_v11 = vshrl.u32 %v5627_v29, 16  ;;  %v2038_v16 = vshll.u32 %v5627_v29, 16  ;;  %v2048_v44 = vshrl.u32 %v5630_v47, 16  ;;  %v2044_v59 = vshll.u32 %v5630_v47, 16  ;;  %v5647_v13 = vld [vmem:[%s4873_s27 + $0xc8] sm:$0x1] }
  0x7f   : > { %v1519_v4 = vsel %vm5283_vm7, %v1517_v24, %v1518_v19  ;;  %v5642_v1 = vcombine.low %v5627_v29, %v5630_v47  ;;  %v6586_v24 = vld [vmem:[#allocation18_spill] sm:$0xff] }
  0x80   : > { %v5560_v10 = vcombine.low %v1516_v15, %v1519_v4  ;;  %v2037_v3 = vrot.slane %v2035_v11, 4  ;;  %v2040_v37 = vrot.slane %v2038_v16, 5  ;;  %v2046_v5 = vrot.slane %v2044_v59, 5  ;;  %v6588_v11 = vld [vmem:[#allocation22_spill] sm:$0xff] }
  0x81   : > { %4389 = vmatmul.mubr.msk.bf16.gmra.mxu1 %vm897_vm3, %v5459_v52  ;;  %v2050_v34 = vrot.slane %v2048_v44, 4  ;;  %v2054_v15 = vshll.u32 %v5647_v13, 16  ;;  %v2925_v59 = vsel %vm946_vm0, %v4025_v14, 0 }
  0x82   : > { %4392 = vmatprep.mubr.msk.bf16.mxu1 %vm897_vm3, %v5483_v18  ;;  %v2041_v56 = vor.u32 %v2040_v37, %v2037_v3 }
  0x83   : > { %4415 = vmatmul.mubr.msk.bf16.gmra.mxu0 %vm897_vm3, %v5487_v28  ;;  %v2051_v19 = vor.u32 %v2050_v34, %v2046_v5 }
  0x84   : > { %4418 = vmatprep.mubr.msk.bf16.mxu0 %vm897_vm3, %v5489_v62 }
  0x89   : > { %4393 = vmatmul.mubr.msk.bf16.gmra.mxu1 %vm897_vm3, %v5510_v48 }
  0x8a   : > { %4396 = vmatprep.mubr.msk.bf16.mxu1 %vm897_vm3, %v5395_v63 }
  0x8b   : > { %4419 = vmatmul.mubr.msk.bf16.gmra.mxu0 %vm897_vm3, %v5517_v43 }
  0x8c   : > { %4422 = vmatprep.mubr.msk.bf16.mxu0 %vm897_vm3, %v5519_v45 }
  0x91   : > { %4397 = vmatmul.mubr.msk.bf16.gmra.mxu1 %vm897_vm3, %v5403_v55 }
  0x92   : > { %4436 = vmatprep.mubr.msk.bf16.mxu1 %vm897_vm3, %v5210_v23  ;;  %v4006_v23 = vld [vmem:[%s6483_s1 + $0xe] sm:$0x3] }
  0x93   : > { %4423 = vmatmul.mubr.msk.bf16.gmra.mxu0 %vm897_vm3, %v5542_v0  ;;  %v2713_v4 = vsel %vm946_vm0, %v4006_v23, 0 }
  0x94   : > { %4426 = vmatprep.mubr.msk.bf16.mxu0 %vm897_vm3, %v5544_v20 }
  0x99   : > { %4437 = vmatmul.mubr.msk.bf16.vlgmr.msra.gmra.mxu1 %vm897_vm3, %v5244_v53 }
  0x9a   : > { %4440 = vmatprep.mubr.msk.bf16.mxu1 %vm897_vm3, %v5276_v42  ;;  %4503 = vmatpush3.bf16.msra.mxu1 %v2279_v6  ;;  %v2042_v6 = vrot.slane %v2041_v56, 4 }
  0x9b   : > { %4427 = vmatmul.mubr.msk.bf16.gmra.mxu0 %vm897_vm3, %v5560_v10  ;;  %4708 = vmatprep.subr.msk.bf16.mxu1 %vm946_vm0, %v4006_v23 }
  0x9c   : > { %4430 = vmatprep.mubr.msk.bf16.mxu0 %vm897_vm3, %v5472_v32  ;;  %v2047_v16 = vsel %vm4916_vm4, %v2042_v6, %v2046_v5  ;;  %v2268_v6 = vrot.slane %v5647_v13, 5 }
  0xa1   : > { %4441 = vmatmul.mubr.msk.bf16.gmra.mxu1 %vm897_vm3, %v5292_v49 }
  0xa2   : > { %4444 = vmatprep.mubr.msk.bf16.mxu1 %vm897_vm3, %v5332_v36 }
  0xa3   : > { %4431 = vmatmul.mubr.msk.bf16.gmra.mxu0 %vm897_vm3, %v5485_v7 }
  0xa4   : > { %4470 = vmatprep.mubr.msk.bf16.mxu0 %vm897_vm3, %v6577_v30  ;;  %v2052_v30 = vrot.slane %v2051_v19, 4  ;;  %v2265_v19 = vrot.slane %v5630_v47, 5 }
  0xa9   : > { %4445 = vmatmul.mubr.msk.bf16.gmra.mxu1 %vm897_vm3, %v5341_v22 }
  0xaa   : > { %4448 = vmatprep.mubr.msk.bf16.mxu1 %vm897_vm3, %v5360_v54 }
  0xab   : > { %4471 = vmatmul.mubr.msk.bf16.vlgmr.msra.gmra.mxu0 %vm897_vm3, %v6578_v60 }
  0xac   : > { %4474 = vmatprep.mubr.msk.bf16.mxu0 %vm897_vm3, %v6579_v12  ;;  %4537 = vmatpush3.bf16.msra.mxu0 %v2485_v41  ;;  %v2056_v41 = vrot.slane %v2054_v15, 5  ;;  %v3969_v15 = vrot.slane %v5627_v29, 9 }
  0xad   : > { %4709 = vmatprep.subr.msk.bf16.mxu0 %vm946_vm0, %v4025_v14 }
  0xae   : > { %v2057_v23 = vsel %vm4916_vm4, %v2052_v30, %v2056_v41 }
  0xaf   : > { %v5669_v44 = vcombine.low %v2047_v16, %v2057_v23 }
  0xb1   : > { %4449 = vmatmul.mubr.msk.bf16.gmra.mxu1 %vm897_vm3, %v5380_v35 }
  0xb2   : > { %4452 = vmatprep.mubr.msk.bf16.mxu1 %vm897_vm3, %v5425_v2 }
  0xb3   : > { %4475 = vmatmul.mubr.msk.bf16.gmra.mxu0 %vm897_vm3, %v6580_v31 }
  0xb4   : > { %4478 = vmatprep.mubr.msk.bf16.mxu0 %vm897_vm3, %v6581_v25 }
  0xb9   : > { %4453 = vmatmul.mubr.msk.bf16.gmra.mxu1 %vm897_vm3, %v5429_v8 }
  0xba   : > { %4456 = vmatprep.mubr.msk.bf16.mxu1 %vm897_vm3, %v5459_v52 }
  0xbb   : > { %4479 = vmatmul.mubr.msk.bf16.gmra.mxu0 %vm897_vm3, %v6582_v58 }
  0xbc   : > { %4482 = vmatprep.mubr.msk.bf16.mxu0 %vm897_vm3, %v5253_v50 }
  0xc1   : > { %4457 = vmatmul.mubr.msk.bf16.gmra.mxu1 %vm897_vm3, %v5483_v18 }
  0xc2   : > { %4460 = vmatprep.mubr.msk.bf16.mxu1 %vm897_vm3, %v5510_v48 }
  0xc3   : > { %4483 = vmatmul.mubr.msk.bf16.gmra.mxu0 %vm897_vm3, %v5288_v61 }
  0xc4   : > { %4486 = vmatprep.mubr.msk.bf16.mxu0 %vm897_vm3, %v5318_v51 }
  0xc9   : > { %4461 = vmatmul.mubr.msk.bf16.gmra.mxu1 %vm897_vm3, %v5395_v63 }
  0xca   : > { %4464 = vmatprep.mubr.msk.bf16.mxu1 %vm897_vm3, %v5403_v55 }
  0xcb   : > { %4487 = vmatmul.mubr.msk.bf16.gmra.mxu0 %vm897_vm3, %v6583_v39 }
  0xcc   : > { %4490 = vmatprep.mubr.msk.bf16.mxu0 %vm897_vm3, %v6584_v57 }
  0xd1   : > { %4465 = vmatmul.mubr.msk.bf16.gmra.mxu1 %vm897_vm3, %v5642_v1 }
  0xd2   : > { %4504 = vmatprep.mubr.msk.bf16.mxu1 %vm897_vm3, %v5315_v17  ;;  %v6587_v17 = vld [vmem:[#allocation20_spill] sm:$0xff] }
  0xd3   : > { %4491 = vmatmul.mubr.msk.bf16.gmra.mxu0 %vm897_vm3, %v6585_v46 }
  0xd4   : > { %4494 = vmatprep.mubr.msk.bf16.mxu0 %vm897_vm3, %v6586_v24 }
  0xd9   : > { %4505 = vmatmul.mubr.msk.bf16.vlgmr.msra.gmra.mxu1 %vm897_vm3, %v5343_v33 }
  0xda   : > { %4508 = vmatprep.mubr.msk.bf16.mxu1 %vm897_vm3, %v5389_v21  ;;  %4571 = vmatpush3.bf16.msra.mxu1 %v2713_v4  ;;  %v2267_v4 = vrot.slane %v2265_v19, 4 }
  0xdb   : > { %4495 = vmatmul.mubr.msk.bf16.gmra.mxu0 %vm897_vm3, %v6587_v17 }
  0xdc   : > { %4498 = vmatprep.mubr.msk.bf16.mxu0 %vm897_vm3, %v6588_v11 }
  0xe1   : > { %4509 = vmatmul.mubr.msk.bf16.gmra.mxu1 %vm897_vm3, %v5399_v27 }
  0xe2   : > { %4512 = vmatprep.mubr.msk.bf16.mxu1 %vm897_vm3, %v5435_v9 }
  0xe3   : > { %4499 = vmatmul.mubr.msk.bf16.gmra.mxu0 %vm897_vm3, %v5669_v44 }
  0xe4   : > { %4538 = vmatprep.mubr.msk.bf16.mxu0 %vm897_vm3, %v5244_v53 }
  0xe9   : > { %4513 = vmatmul.mubr.msk.bf16.gmra.mxu1 %vm897_vm3, %v5443_v38 }
  0xea   : > { %4516 = vmatprep.mubr.msk.bf16.mxu1 %vm897_vm3, %v5487_v28  ;;  %v4336_v3 = vpop.f32.mrf.mxu0 }
  0xeb   : > { %4539 = vmatmul.mubr.msk.bf16.vlgmr.msra.gmra.mxu0 %vm897_vm3, %v5276_v42 }
  0xec   : > { %4542 = vmatprep.mubr.msk.bf16.mxu0 %vm897_vm3, %v5292_v49  ;;  %4605 = vmatpush3.bf16.msra.mxu0 %v2925_v59  ;;  %v984_v37 = vpop.f32.mrf.mxu0 }
  0xee   : > { %v4337_v42 = vpop.f32.mrf.mxu0 }
  0xef   : > { %v5690_v53 = vpop.f32.mrf.mxu1 }
  0xf0   : > { %v987_v49 = vpop.f32.mrf.mxu0 }
  0xf1   : > { %4517 = vmatmul.mubr.msk.bf16.gmra.mxu1 %vm897_vm3, %v5489_v62  ;;  %v5698_v14 = vpop.f32.mrf.mxu1 }
  0xf2   : > { %4520 = vmatprep.mubr.msk.bf16.mxu1 %vm897_vm3, %v5517_v43 }
  0xf3   : > { %4543 = vmatmul.mubr.msk.bf16.gmra.mxu0 %vm897_vm3, %v5332_v36  ;;  %v5702_v5 = vpop.f32.mrf.mxu1 }
  0xf4   : > { %4546 = vmatprep.mubr.msk.bf16.mxu0 %vm897_vm3, %v5341_v22 }
  0xf5   : > { %v5710_v22 = vpop.f32.mrf.mxu1 }
  0xf6   : > { %6589 = vst [vmem:[#allocation9_spill] sm:$0xff] %v5710_v22 }
  0xf9   : > { %4521 = vmatmul.mubr.msk.bf16.gmra.mxu1 %vm897_vm3, %v5519_v45 }
  0xfa   : > { %4524 = vmatprep.mubr.msk.bf16.mxu1 %vm897_vm3, %v5542_v0 }
  0xfb   : > { %4547 = vmatmul.mubr.msk.bf16.gmra.mxu0 %vm897_vm3, %v5360_v54  ;;  %v4340_v36 = vpop.f32.mrf.mxu0 }
  0xfc   : > { %4550 = vmatprep.mubr.msk.bf16.mxu0 %vm897_vm3, %v5380_v35 }
  0xfd   : > { %v1000_v34 = vpop.f32.mrf.mxu0 }
  0xff   : > { %v5714_v56 = vpop.f32.mrf.mxu1  ;;  %v4341_v54 = vpop.f32.mrf.mxu0 }
 0x100   : > { %6590 = vst [vmem:[#allocation7_spill] sm:$0xff] %v5714_v56 }
 0x101   : > { %4525 = vmatmul.mubr.msk.bf16.gmra.mxu1 %vm897_vm3, %v5544_v20  ;;  %v5723_v35 = vpop.f32.mrf.mxu1  ;;  %v1003_v30 = vpop.f32.mrf.mxu0 }
 0x102   : > { %4528 = vmatprep.mubr.msk.bf16.mxu1 %vm897_vm3, %v5560_v10  ;;  %6591 = vst [vmem:[#allocation3_spill] sm:$0xff] %v5723_v35 }
 0x103   : > { %4551 = vmatmul.mubr.msk.bf16.gmra.mxu0 %vm897_vm3, %v5425_v2  ;;  %v5729_v41 = vpop.f32.mrf.mxu1  ;;  %v2266_v2 = vsel %vm5283_vm7, %v3969_v15, %v2265_v19 }
 0x104   : > { %4554 = vmatprep.mubr.msk.bf16.mxu0 %vm897_vm3, %v5429_v8  ;;  %6592 = vst [vmem:[#allocation13_spill] sm:$0xff] %v5729_v41  ;;  %v2269_v8 = vsel %vm5283_vm7, %v2267_v4, %v2268_v6  ;;  %v5773_v41 = vld [vmem:[%s4873_s27 + $0xd0] sm:$0xf] }
 0x105   : > { %v5741_v47 = vpop.f32.mrf.mxu1  ;;  %v5743_v13 = vcombine.low %v2266_v2, %v2269_v8  ;;  %v5770_v8 = vld [vmem:[%s4873_s27 + $0xcc] sm:$0xf] }
 0x107   : > { %6593 = vst [vmem:[#allocation12_spill] sm:$0xff] %v5743_v13 }
 0x109   : > { %4529 = vmatmul.mubr.msk.bf16.gmra.mxu1 %vm897_vm3, %v5472_v32 }
 0x10a   : > { %4532 = vmatprep.mubr.msk.bf16.mxu1 %vm897_vm3, %v5485_v7 }
 0x10b   : > { %4555 = vmatmul.mubr.msk.bf16.gmra.mxu0 %vm897_vm3, %v5459_v52 }
 0x10c   : > { %4558 = vmatprep.mubr.msk.bf16.mxu0 %vm897_vm3, %v5483_v18 }
 0x10d   : > { %v4344_v29 = vpop.f32.mrf.mxu0 }
 0x10f   : > { %v1016_v16 = vpop.f32.mrf.mxu0 }
 0x111   : > { %v5745_v23 = vpop.f32.mrf.mxu1  ;;  %4533 = vmatmul.mubr.msk.bf16.gmra.mxu1 %vm897_vm3, %v5743_v13  ;;  %v4345_v59 = vpop.f32.mrf.mxu0 }
 0x112   : > { %4572 = vmatprep.mubr.msk.bf16.mxu1 %vm897_vm3, %v6578_v60 }
 0x113   : > { %4559 = vmatmul.mubr.msk.bf16.gmra.mxu0 %vm897_vm3, %v5510_v48  ;;  %v5753_v52 = vpop.f32.mrf.mxu1  ;;  %v1019_v19 = vpop.f32.mrf.mxu0 }
 0x114   : > { %4562 = vmatprep.mubr.msk.bf16.mxu0 %vm897_vm3, %v5395_v63 }
 0x115   : > { %v5757_v18 = vpop.f32.mrf.mxu1 }
 0x117   : > { %v5759_v15 = vpop.f32.mrf.mxu1 }
 0x118   : > { %6594 = vst [vmem:[#allocation5_spill] sm:$0xff] %v5759_v15 }
 0x119   : > { %v4348_v4 = vpop.f32.mrf.mxu0  ;;  %v4370_v6 = vpop.f32.mrf.mxu1  ;;  %4573 = vmatmul.mubr.msk.bf16.vlgmr.msra.gmra.mxu1 %vm897_vm3, %v6579_v12 }
 0x11a   : > { %v1285_v60 = vadd.f32 %v4370_v6, %v4336_v3  ;;  %4576 = vmatprep.mubr.msk.bf16.mxu1 %vm897_vm3, %v6580_v31  ;;  %v3989_v31 = vcombine.low %v5770_v8, %v5773_v41 }
 0x11b   : > { %4563 = vmatmul.mubr.msk.bf16.gmra.mxu0 %vm897_vm3, %v5403_v55  ;;  %v1032_v48 = vpop.f32.mrf.mxu0  ;;  %v1276_v2 = vpop.f32.mrf.mxu1 }
 0x11c   : > { %v1277_v63 = vadd.f32 %v1276_v2, %v984_v37  ;;  %4566 = vmatprep.mubr.msk.bf16.mxu0 %vm897_vm3, %v5642_v1 }
 0x11d   : > { %v4349_v13 = vpop.f32.mrf.mxu0  ;;  %v4371_v35 = vpop.f32.mrf.mxu1 }
 0x11e   : > { %v1288_v12 = vadd.f32 %v4371_v35, %v4337_v42 }
 0x11f   : > { %v1035_v3 = vpop.f32.mrf.mxu0  ;;  %v1279_v6 = vpop.f32.mrf.mxu1 }
 0x120   : > { %v1280_v40 = vadd.f32 %v1279_v6, %v987_v49 }
 0x121   : > { %v4374_v55 = vpop.f32.mrf.mxu1  ;;  %4577 = vmatmul.mubr.msk.bf16.gmra.mxu1 %vm897_vm3, %v6581_v25 }
 0x122   : > { %v1301_v37 = vadd.f32 %v4374_v55, %v4340_v36  ;;  %4580 = vmatprep.mubr.msk.bf16.mxu1 %vm897_vm3, %v6582_v58 }
 0x123   : > { %v4352_v1 = vpop.f32.mrf.mxu0  ;;  %4567 = vmatmul.mubr.msk.bf16.gmra.mxu0 %vm897_vm3, %v3989_v31  ;;  %v1292_v2 = vpop.f32.mrf.mxu1 }
 0x124   : > { %v1293_v7 = vadd.f32 %v1292_v2, %v1000_v34  ;;  %4606 = vmatprep.mubr.msk.bf16.mxu0 %vm897_vm3, %v5343_v33 }
 0x125   : > { %v5784_v42 = vpop.f32.mrf.mxu0  ;;  %v4375_v35 = vpop.f32.mrf.mxu1 }
 0x126   : > { %v1304_v49 = vadd.f32 %v4375_v35, %v4341_v54 }
 0x127   : > { %v4353_v6 = vpop.f32.mrf.mxu0  ;;  %v1295_v56 = vpop.f32.mrf.mxu1 }
 0x128   : > { %v1296_v15 = vadd.f32 %v1295_v56, %v1003_v30 }
 0x129   : > { %v5786_v25 = vpop.f32.mrf.mxu0  ;;  %v4378_v36 = vpop.f32.mrf.mxu1  ;;  %4581 = vmatmul.mubr.msk.bf16.gmra.mxu1 %vm897_vm3, %v5253_v50 }
 0x12a   : > { %v1317_v58 = vadd.f32 %v4378_v36, %v4344_v29  ;;  %4584 = vmatprep.mubr.msk.bf16.mxu1 %vm897_vm3, %v5288_v61 }
 0x12b   : > { %v4404_v34 = vpop.f32.mrf.mxu0  ;;  %4607 = vmatmul.mubr.msk.bf16.vlgmr.msra.gmra.mxu0 %vm897_vm3, %v5389_v21  ;;  %v1308_v33 = vpop.f32.mrf.mxu1 }
 0x12c   : > { %v5794_v31 = vadd.f32 %v4404_v34, %v1285_v60  ;;  %v1309_v54 = vadd.f32 %v1308_v33, %v1016_v16  ;;  %4610 = vmatprep.mubr.msk.bf16.mxu0 %vm897_vm3, %v5399_v27  ;;  %v2681_v33 = vshrl.u32 %v5770_v8, 16 }
 0x12d   : > { %v1669_v56 = vpop.f32.mrf.mxu0  ;;  %v4379_v30 = vpop.f32.mrf.mxu1 }
 0x12e   : > { %v5798_v55 = vadd.f32 %v1669_v56, %v1277_v63  ;;  %v1320_v50 = vadd.f32 %v4379_v30, %v4345_v59 }
 0x12f   : > { %v4405_v29 = vpop.f32.mrf.mxu0  ;;  %v1311_v2 = vpop.f32.mrf.mxu1 }
 0x130   : > { %v5800_v35 = vadd.f32 %v4405_v29, %v1288_v12  ;;  %v1312_v61 = vadd.f32 %v1311_v2, %v1019_v19  ;;  %v2683_v29 = vrot.slane %v2681_v33, 4 }
 0x131   : > { %v1672_v36 = vpop.f32.mrf.mxu0  ;;  %v4382_v22 = vpop.f32.mrf.mxu1  ;;  %4585 = vmatmul.mubr.msk.bf16.gmra.mxu1 %vm897_vm3, %v5318_v51 }
 0x132   : > { %v5804_v21 = vadd.f32 %v1672_v36, %v1280_v40  ;;  %v1333_v16 = vadd.f32 %v4382_v22, %v4348_v4  ;;  %4588 = vmatprep.mubr.msk.bf16.mxu1 %vm897_vm3, %v6583_v39 }
 0x133   : > { %v4408_v27 = vpop.f32.mrf.mxu0  ;;  %4611 = vmatmul.mubr.msk.bf16.gmra.mxu0 %vm897_vm3, %v5435_v9  ;;  %v1324_v59 = vpop.f32.mrf.mxu1  ;;  %v2684_v9 = vshll.u32 %v5770_v8, 16 }
 0x134   : > { %v5810_v60 = vadd.f32 %v4408_v27, %v1301_v37  ;;  %v1325_v63 = vadd.f32 %v1324_v59, %v1032_v48  ;;  %4614 = vmatprep.mubr.msk.bf16.mxu0 %vm897_vm3, %v5443_v38  ;;  %v2694_v38 = vshrl.u32 %v5773_v41, 16 }
 0x135   : > { %v1685_v19 = vpop.f32.mrf.mxu0  ;;  %v4383_v12 = vpop.f32.mrf.mxu1 }
 0x136   : > { %v5814_v51 = vadd.f32 %v1685_v19, %v1293_v7  ;;  %v1336_v40 = vadd.f32 %v4383_v12, %v4349_v13  ;;  %v2690_v13 = vshll.u32 %v5773_v41, 16  ;;  %v2696_v27 = vrot.slane %v2694_v38, 4  ;;  %v5837_v12 = vld [vmem:[%s4873_s27 + $0xd4] sm:$0x1] }
 0x137   : > { %v4409_v22 = vpop.f32.mrf.mxu0  ;;  %v1327_v4 = vpop.f32.mrf.mxu1  ;;  %v2700_v33 = vshll.u32 %v5837_v12, 16 }
 0x138   : > { %v5816_v34 = vadd.f32 %v4409_v22, %v1304_v49  ;;  %v1328_v39 = vadd.f32 %v1327_v4, %v1035_v3  ;;  %v2692_v36 = vrot.slane %v2690_v13, 5 }
 0x139   : > { %v1688_v37 = vpop.f32.mrf.mxu0  ;;  %v4386_v56 = vpop.f32.mrf.mxu1  ;;  %4589 = vmatmul.mubr.msk.bf16.gmra.mxu1 %vm897_vm3, %v6584_v57  ;;  %v2702_v38 = vrot.slane %v2700_v33, 5 }
 0x13a   : > { %v5823_v48 = vadd.f32 %v1688_v37, %v1296_v15  ;;  %v1349_v7 = vadd.f32 %v4386_v56, %v4352_v1  ;;  %4592 = vmatprep.mubr.msk.bf16.mxu1 %vm897_vm3, %v6585_v46  ;;  %v2686_v1 = vrot.slane %v2684_v9, 5 }
 0x13b   : > { %v4412_v3 = vpop.f32.mrf.mxu0  ;;  %4615 = vmatmul.mubr.msk.bf16.gmra.mxu0 %vm897_vm3, %v5487_v28  ;;  %v1340_v49 = vpop.f32.mrf.mxu1 }
 0x13c   : > { %v5830_v30 = vadd.f32 %v4412_v3, %v1317_v58  ;;  %4618 = vmatprep.mubr.msk.bf16.mxu0 %vm897_vm3, %v5489_v62 }
 0x13d   : > { %v1701_v57 = vpop.f32.mrf.mxu0  ;;  %v4387_v15 = vpop.f32.mrf.mxu1 }
 0x13e   : > { %v5834_v2 = vadd.f32 %v1701_v57, %v1309_v54  ;;  %v1352_v46 = vadd.f32 %v4387_v15, %v4353_v6  ;;  %v2687_v6 = vor.u32 %v2686_v1, %v2683_v29  ;;  %v2697_v54 = vor.u32 %v2696_v27, %v2692_v36 }
 0x13f   : > { %v4413_v59 = vpop.f32.mrf.mxu0  ;;  %v1343_v19 = vpop.f32.mrf.mxu1  ;;  %v1341_v1 = vadd.f32 %v1340_v49, %v5784_v42 }
 0x140   : > { %v5839_v28 = vadd.f32 %v4413_v59, %v1320_v50  ;;  %v1344_v58 = vadd.f32 %v1343_v19, %v5786_v25  ;;  %v2688_v56 = vrot.slane %v2687_v6, 4 }
 0x141   : > { %v1704_v22 = vpop.f32.mrf.mxu0  ;;  %v4390_v4 = vpop.f32.mrf.mxu1  ;;  %4593 = vmatmul.mubr.msk.bf16.gmra.mxu1 %vm897_vm3, %v6586_v24 }
 0x142   : > { %v5844_v62 = vadd.f32 %v1704_v22, %v1312_v61  ;;  %4596 = vmatprep.mubr.msk.bf16.mxu1 %vm897_vm3, %v6587_v17  ;;  %v2698_v17 = vrot.slane %v2697_v54, 4  ;;  %v1365_v42 = vadd.f32 %v4390_v4, %v5690_v53 }
 0x143   : > { %v4416_v9 = vpop.f32.mrf.mxu0  ;;  %4619 = vmatmul.mubr.msk.bf16.gmra.mxu0 %vm897_vm3, %v5517_v43  ;;  %v1356_v50 = vpop.f32.mrf.mxu1 }
 0x144   : > { %v5851_v25 = vadd.f32 %v4416_v9, %v1333_v16  ;;  %4622 = vmatprep.mubr.msk.bf16.mxu0 %vm897_vm3, %v5519_v45  ;;  %v2693_v45 = vsel %vm4916_vm4, %v2688_v56, %v2692_v36  ;;  %v2703_v16 = vsel %vm4916_vm4, %v2698_v17, %v2702_v38  ;;  %v1357_v33 = vadd.f32 %v1356_v50, %v5698_v14  ;;  %v6595_v50 = vld [vmem:[#allocation9_spill] sm:$0xff] }
 0x145   : > { %v1717_v24 = vpop.f32.mrf.mxu0  ;;  %v4391_v61 = vpop.f32.mrf.mxu1 }
 0x146   : > { %v5855_v37 = vadd.f32 %v1717_v24, %v1325_v63 }
 0x147   : > { %v4417_v13 = vpop.f32.mrf.mxu0  ;;  %v1359_v3 = vpop.f32.mrf.mxu1 }
 0x148   : > { %v5857_v57 = vadd.f32 %v4417_v13, %v1336_v40  ;;  %v1360_v17 = vadd.f32 %v1359_v3, %v6595_v50 }
 0x149   : > { %v1720_v15 = vpop.f32.mrf.mxu0  ;;  %v4394_v29 = vpop.f32.mrf.mxu1  ;;  %4597 = vmatmul.mubr.msk.bf16.gmra.mxu1 %vm897_vm3, %v6588_v11 }
 0x14a   : > { %v5861_v43 = vadd.f32 %v1720_v15, %v1328_v39  ;;  %4600 = vmatprep.mubr.msk.bf16.mxu1 %vm897_vm3, %v5669_v44  ;;  %v4007_v39 = vcombine.low %v2693_v45, %v2703_v16 }
 0x14b   : > { %v4420_v63 = vpop.f32.mrf.mxu0  ;;  %4623 = vmatmul.mubr.msk.bf16.gmra.mxu0 %vm897_vm3, %v5542_v0  ;;  %v1372_v40 = vpop.f32.mrf.mxu1 }
 0x14c   : > { %v5872_v27 = vadd.f32 %v4420_v63, %v1349_v7  ;;  %4626 = vmatprep.mubr.msk.bf16.mxu0 %vm897_vm3, %v5544_v20 }
 0x14d   : > { %v1733_v11 = vpop.f32.mrf.mxu0  ;;  %v4395_v44 = vpop.f32.mrf.mxu1 }
 0x14e   : > { %v5876_v59 = vadd.f32 %v1733_v11, %v1341_v1  ;;  %v6598_v1 = vld [vmem:[#allocation4_spill] sm:$0xff] }
 0x14f   : > { %v4421_v36 = vpop.f32.mrf.mxu0  ;;  %v1375_v26 = vpop.f32.mrf.mxu1 }
 0x150   : > { %v5878_v19 = vadd.f32 %v4421_v36, %v1352_v46  ;;  %v1376_v22 = vadd.f32 %v1375_v26, %v5741_v47  ;;  %v2911_v46 = vrot.slane %v5773_v41, 5  ;;  %v4024_v41 = vrot.slane %v5770_v8, 9 }
 0x151   : > { %v1736_v0 = vpop.f32.mrf.mxu0  ;;  %v4398_v6 = vpop.f32.mrf.mxu1  ;;  %4601 = vmatmul.mubr.msk.bf16.gmra.mxu1 %vm897_vm3, %v4007_v39  ;;  %v6600_v39 = vld [vmem:[#allocation3_spill] sm:$0xff] }
 0x152   : > { %v5883_v7 = vadd.f32 %v1736_v0, %v1344_v58  ;;  %v1397_v20 = vadd.f32 %v4398_v6, %v5745_v23  ;;  %v1368_v23 = vadd.f32 %v4391_v61, %v5702_v5  ;;  %v2913_v14 = vrot.slane %v2911_v46, 4  ;;  %v6597_v5 = vld [vmem:[#allocation7_spill] sm:$0xff]  ;;  %v6601_v0 = vld [vmem:[#allocation12_spill] sm:$0xff] }
 0x153   : > { %v4424_v49 = vpop.f32.mrf.mxu0  ;;  %4627 = vmatmul.mubr.msk.bf16.gmra.mxu0 %vm897_vm3, %v5560_v10  ;;  %v1388_v54 = vpop.f32.mrf.mxu1  ;;  %v1381_v61 = vadd.f32 %v4394_v29, %v6597_v5  ;;  %v2912_v11 = vsel %vm5283_vm7, %v4024_v41, %v2911_v46  ;;  %v1373_v36 = vadd.f32 %v1372_v40, %v6600_v39 }
 0x154   : > { %v5890_v47 = vadd.f32 %v4424_v49, %v1365_v42  ;;  %v1389_v9 = vadd.f32 %v1388_v54, %v5753_v52  ;;  %4630 = vmatprep.mubr.msk.bf16.mxu0 %vm897_vm3, %v5472_v32  ;;  %v6596_v52 = vld [vmem:[#allocation5_spill] sm:$0xff]  ;;  %v2914_v32 = vrot.slane %v5837_v12, 5 }
 0x155   : > { %v1749_v53 = vpop.f32.mrf.mxu0  ;;  %v4399_v58 = vpop.f32.mrf.mxu1  ;;  %v6602_v42 = vld [vmem:[#allocation13_spill] sm:$0xff] }
 0x156   : > { %v5896_v4 = vadd.f32 %v1749_v53, %v1357_v33  ;;  %v1400_v10 = vadd.f32 %v4399_v58, %v5757_v18  ;;  %v1384_v49 = vadd.f32 %v4395_v44, %v6602_v42 }
 0x157   : > { %v4425_v24 = vpop.f32.mrf.mxu0  ;;  %v1391_v56 = vpop.f32.mrf.mxu1 }
 0x158   : > { %v5901_v38 = vadd.f32 %v4425_v24, %v1368_v23  ;;  %v1392_v13 = vadd.f32 %v1391_v56, %v6596_v52 }
 0x159   : > { %v1752_v15 = vpop.f32.mrf.mxu0  ;;  %v4438_v45 = vpop.f32.mrf.mxu1 }
 0x15a   : > { %v5906_v16 = vadd.f32 %v1752_v15, %v1360_v17  ;;  %v2004_v18 = vadd.f32 %v4438_v45, %v5794_v31  ;;  %v2915_v31 = vsel %vm5283_vm7, %v2913_v14, %v2914_v32 }
 0x15b   : > { %v4428_v63 = vpop.f32.mrf.mxu0  ;;  %4631 = vmatmul.mubr.msk.bf16.gmra.mxu0 %vm897_vm3, %v6598_v1  ;;  %v1875_v8 = vpop.f32.mrf.mxu1  ;;  %v4026_v53 = vcombine.low %v2912_v11, %v2915_v31 }
 0x15c   : > { %v5914_v26 = vadd.f32 %v4428_v63, %v1381_v61  ;;  %v2002_v12 = vadd.f32 %v1875_v8, %v5798_v55  ;;  %4634 = vmatprep.mubr.msk.bf16.mxu0 %vm897_vm3, %v6601_v0 }
 0x15d   : > { %v1765_v29 = vpop.f32.mrf.mxu0  ;;  %v4439_v6 = vpop.f32.mrf.mxu1 }
 0x15e   : > { %v5922_v54 = vadd.f32 %v1765_v29, %v1373_v36  ;;  %v2005_v46 = vadd.f32 %v4439_v6, %v5800_v35 }
 0x15f   : > { %v4429_v33 = vpop.f32.mrf.mxu0  ;;  %v1878_v40 = vpop.f32.mrf.mxu1 }
 0x160   : > { %v5925_v58 = vadd.f32 %v4429_v33, %v1384_v49  ;;  %v2003_v55 = vadd.f32 %v1878_v40, %v5804_v21 }
 0x161   : > { %v1768_v23 = vpop.f32.mrf.mxu0  ;;  %v4442_v24 = vpop.f32.mrf.mxu1 }
 0x162   : > { %v5928_v56 = vadd.f32 %v1768_v23, %v1376_v22  ;;  %v2008_v41 = vadd.f32 %v4442_v24, %v5810_v60 }
 0x163   : > { %v4432_v14 = vpop.f32.mrf.mxu0  ;;  %4635 = vmatmul.mubr.msk.bf16.gmra.mxu0 %vm897_vm3, %v4026_v53  ;;  %v1891_v44 = vpop.f32.mrf.mxu1 }
 0x164   : > { %v5932_v50 = vadd.f32 %v4432_v14, %v1397_v20  ;;  %v2006_v35 = vadd.f32 %v1891_v44, %v5814_v51 }
 0x165   : > { %v1781_v17 = vpop.f32.mrf.mxu0  ;;  %v4443_v52 = vpop.f32.mrf.mxu1 }
 0x166   : > { %v5935_v32 = vadd.f32 %v1781_v17, %v1389_v9  ;;  %v2009_v21 = vadd.f32 %v4443_v52, %v5816_v34 }
 0x167   : > { %v4433_v15 = vpop.f32.mrf.mxu0  ;;  %v1894_v45 = vpop.f32.mrf.mxu1 }
 0x168   : > { %v5938_v22 = vadd.f32 %v4433_v15, %v1400_v10  ;;  %v2007_v60 = vadd.f32 %v1894_v45, %v5823_v48 }
 0x169   : > { %v1784_v5 = vpop.f32.mrf.mxu0  ;;  %v4446_v61 = vpop.f32.mrf.mxu1 }
 0x16a   : > { %v5941_v63 = vadd.f32 %v1784_v5, %v1392_v13  ;;  %v2012_v20 = vadd.f32 %v4446_v61, %v5830_v30 }
 0x16b   : > { %v4472_v1 = vpop.f32.mrf.mxu0  ;;  %v1907_v51 = vpop.f32.mrf.mxu1 }
 0x16c   : > { %v5944_v8 = vadd.f32 %v4472_v1, %v2004_v18  ;;  %v2010_v9 = vadd.f32 %v1907_v51, %v5834_v2 }
 0x16d   : > { %v2103_v3 = vpop.f32.mrf.mxu0  ;;  %v4447_v34 = vpop.f32.mrf.mxu1 }
 0x16e   : > { %v5947_v11 = vadd.f32 %v2103_v3, %v2002_v12  ;;  %v2013_v10 = vadd.f32 %v4447_v34, %v5839_v28 }
 0x16f   : > { %v4473_v39 = vpop.f32.mrf.mxu0  ;;  %v1910_v48 = vpop.f32.mrf.mxu1 }
 0x170   : > { %v5950_v36 = vadd.f32 %v4473_v39, %v2005_v46  ;;  %v2011_v13 = vadd.f32 %v1910_v48, %v5844_v62 }
 0x171   : > { %v2106_v0 = vpop.f32.mrf.mxu0  ;;  %v4450_v30 = vpop.f32.mrf.mxu1 }
 0x172   : > { %v5953_v31 = vadd.f32 %v2106_v0, %v2003_v55  ;;  %v2016_v18 = vadd.f32 %v4450_v30, %v5851_v25 }
 0x173   : > { %v4476_v29 = vpop.f32.mrf.mxu0  ;;  %v1923_v2 = vpop.f32.mrf.mxu1 }
 0x174   : > { %v5956_v6 = vadd.f32 %v4476_v29, %v2008_v41  ;;  %v2014_v12 = vadd.f32 %v1923_v2, %v5855_v37 }
 0x175   : > { %v2119_v42 = vpop.f32.mrf.mxu0  ;;  %v4451_v28 = vpop.f32.mrf.mxu1 }
 0x176   : > { %v5959_v49 = vadd.f32 %v2119_v42, %v2006_v35  ;;  %v2017_v46 = vadd.f32 %v4451_v28, %v5857_v57 }
 0x177   : > { %v4477_v33 = vpop.f32.mrf.mxu0  ;;  %v1926_v62 = vpop.f32.mrf.mxu1 }
 0x178   : > { %v5962_v40 = vadd.f32 %v4477_v33, %v2009_v21  ;;  %v2015_v53 = vadd.f32 %v1926_v62, %v5861_v43 }
 0x179   : > { %v2122_v55 = vpop.f32.mrf.mxu0  ;;  %v4454_v25 = vpop.f32.mrf.mxu1 }
 0x17a   : > { %v5965_v23 = vadd.f32 %v2122_v55, %v2007_v60  ;;  %v2020_v24 = vadd.f32 %v4454_v25, %v5872_v27 }
 0x17b   : > { %v4480_v41 = vpop.f32.mrf.mxu0  ;;  %v1939_v37 = vpop.f32.mrf.mxu1 }
 0x17c   : > { %v5968_v14 = vadd.f32 %v4480_v41, %v2012_v20  ;;  %v2018_v44 = vadd.f32 %v1939_v37, %v5876_v59 }
 0x17d   : > { %v2135_v35 = vpop.f32.mrf.mxu0  ;;  %v4455_v57 = vpop.f32.mrf.mxu1 }
 0x17e   : > { %v5971_v17 = vadd.f32 %v2135_v35, %v2010_v9  ;;  %v2021_v52 = vadd.f32 %v4455_v57, %v5878_v19 }
 0x17f   : > { %v4481_v21 = vpop.f32.mrf.mxu0  ;;  %v1942_v43 = vpop.f32.mrf.mxu1 }
 0x180   : > { %v5974_v15 = vadd.f32 %v4481_v21, %v2013_v10  ;;  %v2019_v45 = vadd.f32 %v1942_v43, %v5883_v7 }
 0x181   : > { %v2138_v60 = vpop.f32.mrf.mxu0  ;;  %v4458_v27 = vpop.f32.mrf.mxu1 }
 0x182   : > { %v5977_v5 = vadd.f32 %v2138_v60, %v2011_v13  ;;  %v2024_v61 = vadd.f32 %v4458_v27, %v5890_v47 }
 0x183   : > { %v4484_v20 = vpop.f32.mrf.mxu0  ;;  %v1955_v59 = vpop.f32.mrf.mxu1 }
 0x184   : > { %v5980_v1 = vadd.f32 %v4484_v20, %v2016_v18  ;;  %v2022_v51 = vadd.f32 %v1955_v59, %v5896_v4 }
 0x185   : > { %v2151_v9 = vpop.f32.mrf.mxu0  ;;  %v4459_v19 = vpop.f32.mrf.mxu1 }
 0x186   : > { %v5983_v3 = vadd.f32 %v2151_v9, %v2014_v12  ;;  %v2025_v34 = vadd.f32 %v4459_v19, %v5901_v38 }
 0x187   : > { %v4485_v10 = vpop.f32.mrf.mxu0  ;;  %v1958_v7 = vpop.f32.mrf.mxu1 }
 0x188   : > { %v5986_v39 = vadd.f32 %v4485_v10, %v2017_v46  ;;  %v2023_v48 = vadd.f32 %v1958_v7, %v5906_v16 }
 0x189   : > { %v2154_v13 = vpop.f32.mrf.mxu0  ;;  %v4462_v47 = vpop.f32.mrf.mxu1 }
 0x18a   : > { %v5989_v0 = vadd.f32 %v2154_v13, %v2015_v53  ;;  %v2028_v30 = vadd.f32 %v4462_v47, %v5914_v26 }
 0x18b   : > { %v4488_v18 = vpop.f32.mrf.mxu0  ;;  %v1971_v4 = vpop.f32.mrf.mxu1 }
 0x18c   : > { %v5992_v29 = vadd.f32 %v4488_v18, %v2020_v24  ;;  %v2026_v2 = vadd.f32 %v1971_v4, %v5922_v54 }
 0x18d   : > { %v2167_v12 = vpop.f32.mrf.mxu0  ;;  %v4463_v38 = vpop.f32.mrf.mxu1 }
 0x18e   : > { %v5995_v42 = vadd.f32 %v2167_v12, %v2018_v44  ;;  %v2029_v28 = vadd.f32 %v4463_v38, %v5925_v58 }
 0x18f   : > { %v4489_v46 = vpop.f32.mrf.mxu0  ;;  %v1974_v16 = vpop.f32.mrf.mxu1 }
 0x190   : > { %v5998_v33 = vadd.f32 %v4489_v46, %v2021_v52  ;;  %v2027_v62 = vadd.f32 %v1974_v16, %v5928_v56 }
 0x191   : > { %v2170_v53 = vpop.f32.mrf.mxu0  ;;  %v4466_v26 = vpop.f32.mrf.mxu1 }
 0x192   : > { %v6001_v55 = vadd.f32 %v2170_v53, %v2019_v45  ;;  %v2032_v25 = vadd.f32 %v4466_v26, %v5932_v50 }
 0x193   : > { %v4492_v24 = vpop.f32.mrf.mxu0  ;;  %v1987_v54 = vpop.f32.mrf.mxu1 }
 0x194   : > { %v6004_v41 = vadd.f32 %v4492_v24, %v2024_v61  ;;  %v2030_v37 = vadd.f32 %v1987_v54, %v5935_v32 }
 0x195   : > { %v2183_v44 = vpop.f32.mrf.mxu0  ;;  %v4467_v58 = vpop.f32.mrf.mxu1 }
 0x196   : > { %v6007_v35 = vadd.f32 %v2183_v44, %v2022_v51  ;;  %v2033_v57 = vadd.f32 %v4467_v58, %v5938_v22 }
 0x197   : > { %v4493_v52 = vpop.f32.mrf.mxu0  ;;  %v1990_v56 = vpop.f32.mrf.mxu1 }
 0x198   : > { %v6010_v21 = vadd.f32 %v4493_v52, %v2025_v34  ;;  %v2031_v43 = vadd.f32 %v1990_v56, %v5941_v63 }
 0x199   : > { %v2186_v45 = vpop.f32.mrf.mxu0  ;;  %v4506_v50 = vpop.f32.mrf.mxu1 }
 0x19a   : > { %v6013_v60 = vadd.f32 %v2186_v45, %v2023_v48  ;;  %v2444_v27 = vadd.f32 %v4506_v50, %v5944_v8 }
 0x19b   : > { %v4496_v61 = vpop.f32.mrf.mxu0  ;;  %v2315_v32 = vpop.f32.mrf.mxu1 }
 0x19c   : > { %v6016_v20 = vadd.f32 %v4496_v61, %v2028_v30  ;;  %v2442_v59 = vadd.f32 %v2315_v32, %v5947_v11 }
 0x19d   : > { %v2199_v51 = vpop.f32.mrf.mxu0  ;;  %v4507_v22 = vpop.f32.mrf.mxu1 }
 0x19e   : > { %v6019_v9 = vadd.f32 %v2199_v51, %v2026_v2  ;;  %v2445_v19 = vadd.f32 %v4507_v22, %v5950_v36 }
 0x19f   : > { %v4497_v34 = vpop.f32.mrf.mxu0  ;;  %v2318_v63 = vpop.f32.mrf.mxu1 }
 0x1a0   : > { %v6022_v10 = vadd.f32 %v4497_v34, %v2029_v28  ;;  %v2443_v7 = vadd.f32 %v2318_v63, %v5953_v31 }
 0x1a1   : > { %v2202_v48 = vpop.f32.mrf.mxu0  ;;  %v4510_v8 = vpop.f32.mrf.mxu1 }
 0x1a2   : > { %v6025_v13 = vadd.f32 %v2202_v48, %v2027_v62  ;;  %v2448_v47 = vadd.f32 %v4510_v8, %v5956_v6 }
 0x1a3   : > { %v4500_v30 = vpop.f32.mrf.mxu0  ;;  %v2331_v11 = vpop.f32.mrf.mxu1 }
 0x1a4   : > { %v6028_v18 = vadd.f32 %v4500_v30, %v2032_v25  ;;  %v2446_v4 = vadd.f32 %v2331_v11, %v5959_v49 }
 0x1a5   : > { %v2215_v2 = vpop.f32.mrf.mxu0  ;;  %v4511_v36 = vpop.f32.mrf.mxu1 }
 0x1a6   : > { %v6031_v12 = vadd.f32 %v2215_v2, %v2030_v37  ;;  %v2449_v38 = vadd.f32 %v4511_v36, %v5962_v40 }
 0x1a7   : > { %v4501_v28 = vpop.f32.mrf.mxu0  ;;  %v2334_v31 = vpop.f32.mrf.mxu1 }
 0x1a8   : > { %v6034_v46 = vadd.f32 %v4501_v28, %v2033_v57  ;;  %v2447_v16 = vadd.f32 %v2334_v31, %v5965_v23 }
 0x1a9   : > { %v2218_v62 = vpop.f32.mrf.mxu0  ;;  %v4514_v6 = vpop.f32.mrf.mxu1 }
 0x1aa   : > { %v6037_v53 = vadd.f32 %v2218_v62, %v2031_v43  ;;  %v2452_v26 = vadd.f32 %v4514_v6, %v5968_v14 }
 0x1ab   : > { %v4540_v25 = vpop.f32.mrf.mxu0  ;;  %v2347_v49 = vpop.f32.mrf.mxu1 }
 0x1ac   : > { %v6040_v24 = vadd.f32 %v4540_v25, %v2444_v27  ;;  %v2450_v54 = vadd.f32 %v2347_v49, %v5971_v17 }
 0x1ad   : > { %v2521_v37 = vpop.f32.mrf.mxu0  ;;  %v4515_v40 = vpop.f32.mrf.mxu1 }
 0x1ae   : > { %v6043_v44 = vadd.f32 %v2521_v37, %v2442_v59  ;;  %v2453_v58 = vadd.f32 %v4515_v40, %v5974_v15 }
 0x1af   : > { %v4541_v57 = vpop.f32.mrf.mxu0  ;;  %v2350_v23 = vpop.f32.mrf.mxu1 }
 0x1b0   : > { %v6046_v52 = vadd.f32 %v4541_v57, %v2445_v19  ;;  %v2451_v56 = vadd.f32 %v2350_v23, %v5977_v5 }
 0x1b1   : > { %v2524_v43 = vpop.f32.mrf.mxu0  ;;  %v4518_v14 = vpop.f32.mrf.mxu1 }
 0x1b2   : > { %v6049_v45 = vadd.f32 %v2524_v43, %v2443_v7  ;;  %v2456_v50 = vadd.f32 %v4518_v14, %v5980_v1 }
 0x1b3   : > { %v4544_v27 = vpop.f32.mrf.mxu0  ;;  %v2363_v17 = vpop.f32.mrf.mxu1 }
 0x1b4   : > { %v6052_v61 = vadd.f32 %v4544_v27, %v2448_v47  ;;  %v2454_v32 = vadd.f32 %v2363_v17, %v5983_v3 }
 0x1b5   : > { %v2537_v59 = vpop.f32.mrf.mxu0  ;;  %v4519_v15 = vpop.f32.mrf.mxu1 }
 0x1b6   : > { %v6055_v51 = vadd.f32 %v2537_v59, %v2446_v4  ;;  %v2457_v22 = vadd.f32 %v4519_v15, %v5986_v39  ;;  %v6536_v59 = vmov 0.00390625  }
 0x1b7   : > { %v4545_v19 = vpop.f32.mrf.mxu0  ;;  %v2366_v5 = vpop.f32.mrf.mxu1  ;;  %3255 = vmatprep.mubr.f32.mxu1 %v6536_v59 }
 0x1b8   : > { %v6058_v34 = vadd.f32 %v4545_v19, %v2449_v38  ;;  %v2455_v63 = vadd.f32 %v2366_v5, %v5989_v0 }
 0x1b9   : > { %v2540_v7 = vpop.f32.mrf.mxu0  ;;  %v4522_v1 = vpop.f32.mrf.mxu1 }
 0x1ba   : > { %v6061_v48 = vadd.f32 %v2540_v7, %v2447_v16  ;;  %v2460_v8 = vadd.f32 %v4522_v1, %v5992_v29 }
 0x1bb   : > { %v4548_v47 = vpop.f32.mrf.mxu0  ;;  %v2379_v3 = vpop.f32.mrf.mxu1 }
 0x1bc   : > { %v6064_v30 = vadd.f32 %v4548_v47, %v2452_v26  ;;  %v2458_v11 = vadd.f32 %v2379_v3, %v5995_v42 }
 0x1bd   : > { %v2553_v4 = vpop.f32.mrf.mxu0  ;;  %v4523_v39 = vpop.f32.mrf.mxu1 }
 0x1be   : > { %v6067_v2 = vadd.f32 %v2553_v4, %v2450_v54  ;;  %v2461_v36 = vadd.f32 %v4523_v39, %v5998_v33 }
 0x1bf   : > { %v4549_v38 = vpop.f32.mrf.mxu0  ;;  %v2382_v0 = vpop.f32.mrf.mxu1 }
 0x1c0   : > { %v6070_v28 = vadd.f32 %v4549_v38, %v2453_v58  ;;  %v2459_v31 = vadd.f32 %v2382_v0, %v6001_v55 }
 0x1c1   : > { %v2556_v16 = vpop.f32.mrf.mxu0  ;;  %v4526_v29 = vpop.f32.mrf.mxu1 }
 0x1c2   : > { %v6073_v62 = vadd.f32 %v2556_v16, %v2451_v56  ;;  %v2464_v6 = vadd.f32 %v4526_v29, %v6004_v41 }
 0x1c3   : > { %v4552_v26 = vpop.f32.mrf.mxu0  ;;  %v2395_v42 = vpop.f32.mrf.mxu1 }
 0x1c4   : > { %v6076_v25 = vadd.f32 %v4552_v26, %v2456_v50  ;;  %v2462_v49 = vadd.f32 %v2395_v42, %v6007_v35 }
 0x1c5   : > { %v2569_v54 = vpop.f32.mrf.mxu0  ;;  %v4527_v33 = vpop.f32.mrf.mxu1 }
 0x1c6   : > { %v6079_v37 = vadd.f32 %v2569_v54, %v2454_v32  ;;  %v2465_v40 = vadd.f32 %v4527_v33, %v6010_v21 }
 0x1c7   : > { %v4553_v58 = vpop.f32.mrf.mxu0  ;;  %v2398_v55 = vpop.f32.mrf.mxu1 }
 0x1c8   : > { %v6082_v57 = vadd.f32 %v4553_v58, %v2457_v22  ;;  %v2463_v23 = vadd.f32 %v2398_v55, %v6013_v60 }
 0x1c9   : > { %v2572_v56 = vpop.f32.mrf.mxu0  ;;  %v4530_v41 = vpop.f32.mrf.mxu1 }
 0x1ca   : > { %v6085_v43 = vadd.f32 %v2572_v56, %v2455_v63  ;;  %v2468_v14 = vadd.f32 %v4530_v41, %v6016_v20 }
 0x1cb   : > { %v4556_v50 = vpop.f32.mrf.mxu0  ;;  %v2411_v35 = vpop.f32.mrf.mxu1 }
 0x1cc   : > { %v6088_v27 = vadd.f32 %v4556_v50, %v2460_v8  ;;  %v2466_v17 = vadd.f32 %v2411_v35, %v6019_v9 }
 0x1cd   : > { %v2585_v32 = vpop.f32.mrf.mxu0  ;;  %v4531_v21 = vpop.f32.mrf.mxu1 }
 0x1ce   : > { %6603 = vst [vmem:[#allocation10_spill] sm:$0xff] %v6088_v27  ;;  %v6092_v15 = vadd.f32 %v2585_v32, %v2458_v11  ;;  %v2469_v60 = vadd.f32 %v4531_v21, %v6022_v10 }
 0x1cf   : > { %v4557_v22 = vpop.f32.mrf.mxu0  ;;  %v2414_v19 = vpop.f32.mrf.mxu1 }
 0x1d0   : > { %6604 = vst [vmem:[#allocation15_spill] sm:$0xff] %v6092_v15  ;;  %v6095_v5 = vadd.f32 %v4557_v22, %v2461_v36  ;;  %v2467_v20 = vadd.f32 %v2414_v19, %v6025_v13 }
 0x1d1   : > { %v2588_v63 = vpop.f32.mrf.mxu0  ;;  %v4534_v7 = vpop.f32.mrf.mxu1 }
 0x1d2   : > { %6605 = vst [vmem:[#allocation8_spill] sm:$0xff] %v6095_v5  ;;  %v6098_v1 = vadd.f32 %v2588_v63, %v2459_v31  ;;  %v2472_v9 = vadd.f32 %v4534_v7, %v6028_v18 }
 0x1d3   : > { %v4560_v8 = vpop.f32.mrf.mxu0  ;;  %v2427_v47 = vpop.f32.mrf.mxu1 }
 0x1d4   : > { %6606 = vst [vmem:[#allocation14_spill] sm:$0xff] %v6098_v1  ;;  %v6101_v3 = vadd.f32 %v4560_v8, %v2464_v6  ;;  %v2470_v11 = vadd.f32 %v2427_v47, %v6031_v12 }
 0x1d5   : > { %v2601_v4 = vpop.f32.mrf.mxu0  ;;  %v6104_v10 = vpop.f32.mrf.mxu1 }
 0x1d6   : > { %v6106_v39 = vadd.f32 %v2601_v4, %v2462_v49 }
 0x1d7   : > { %v4561_v36 = vpop.f32.mrf.mxu0  ;;  %v6108_v38 = vpop.f32.mrf.mxu1 }
 0x1d8   : > { %6607 = vst [vmem:[#allocation17_spill] sm:$0xff] %v6106_v39  ;;  %v6110_v13 = vadd.f32 %v4561_v36, %v2465_v40 }
 0x1d9   : > { %v2604_v0 = vpop.f32.mrf.mxu0  ;;  %v4574_v31 = vpop.f32.mrf.mxu1 }
 0x1da   : > { %v6112_v16 = vadd.f32 %v2604_v0, %v2463_v23  ;;  %v2878_v18 = vadd.f32 %v4574_v31, %v6040_v24 }
 0x1db   : > { %v4564_v29 = vpop.f32.mrf.mxu0  ;;  %v2749_v6 = vpop.f32.mrf.mxu1 }
 0x1dc   : > { %6608 = vst [vmem:[#allocation19_spill] sm:$0xff] %v6112_v16  ;;  %v6115_v26 = vadd.f32 %v4564_v29, %v2468_v14  ;;  %v2876_v12 = vadd.f32 %v2749_v6, %v6043_v44 }
 0x1dd   : > { %v2617_v42 = vpop.f32.mrf.mxu0  ;;  %v4575_v49 = vpop.f32.mrf.mxu1 }
 0x1de   : > { %v6118_v54 = vadd.f32 %v2617_v42, %v2466_v17  ;;  %v2879_v33 = vadd.f32 %v4575_v49, %v6046_v52 }
 0x1df   : > { %v4565_v40 = vpop.f32.mrf.mxu0  ;;  %v2752_v58 = vpop.f32.mrf.mxu1 }
 0x1e0   : > { %v6121_v55 = vadd.f32 %v4565_v40, %v2469_v60  ;;  %v2877_v23 = vadd.f32 %v2752_v58, %v6049_v45 }
 0x1e1   : > { %v2620_v56 = vpop.f32.mrf.mxu0  ;;  %v4578_v24 = vpop.f32.mrf.mxu1 }
 0x1e2   : > { %v6124_v41 = vadd.f32 %v2620_v56, %v2467_v20  ;;  %v2882_v14 = vadd.f32 %v4578_v24, %v6052_v61 }
 0x1e3   : > { %v4568_v50 = vpop.f32.mrf.mxu0  ;;  %v2765_v44 = vpop.f32.mrf.mxu1 }
 0x1e4   : > { %v6127_v35 = vadd.f32 %v4568_v50, %v2472_v9  ;;  %v2880_v17 = vadd.f32 %v2765_v44, %v6055_v51 }
 0x1e5   : > { %v2633_v32 = vpop.f32.mrf.mxu0  ;;  %v4579_v52 = vpop.f32.mrf.mxu1 }
 0x1e6   : > { %v6130_v21 = vadd.f32 %v2633_v32, %v2470_v11  ;;  %v2883_v60 = vadd.f32 %v4579_v52, %v6058_v34 }
 0x1e7   : > { %v6133_v22 = vpop.f32.mrf.mxu0  ;;  %v2768_v45 = vpop.f32.mrf.mxu1 }
 0x1e8   : > { %v2881_v19 = vadd.f32 %v2768_v45, %v6061_v48 }
 0x1e9   : > { %v6136_v20 = vpop.f32.mrf.mxu0  ;;  %v6138_v61 = vpop.f32.mrf.mxu1 }
 0x1eb   : > { %v4608_v63 = vpop.f32.mrf.mxu0  ;;  %v6140_v7 = vpop.f32.mrf.mxu1 }
 0x1ec   : > { %v6142_v9 = vadd.f32 %v4608_v63, %v2878_v18 }
 0x1ed   : > { %v2961_v51 = vpop.f32.mrf.mxu0  ;;  %v6144_v8 = vpop.f32.mrf.mxu1 }
 0x1ee   : > { %6609 = vst [vmem:[#allocation21_spill] sm:$0xff] %v6142_v9  ;;  %v6146_v47 = vadd.f32 %v2961_v51, %v2876_v12 }
 0x1ef   : > { %v4609_v34 = vpop.f32.mrf.mxu0  ;;  %v6148_v11 = vpop.f32.mrf.mxu1 }
 0x1f0   : > { %6610 = vst [vmem:[#allocation23_spill] sm:$0xff] %v6146_v47  ;;  %v6150_v4 = vadd.f32 %v4609_v34, %v2879_v33 }
 0x1f1   : > { %v2964_v48 = vpop.f32.mrf.mxu0  ;;  %v4586_v36 = vpop.f32.mrf.mxu1 }
 0x1f2   : > { %6611 = vst [vmem:[#allocation6_spill] sm:$0xff] %v6150_v4  ;;  %v6152_v0 = vadd.f32 %v2964_v48, %v2877_v23 }
 0x1f3   : > { %v4612_v31 = vpop.f32.mrf.mxu0  ;;  %v6154_v29 = vpop.f32.mrf.mxu1 }
 0x1f4   : > { %6612 = vst [vmem:[#allocation11_spill] sm:$0xff] %v6152_v0  ;;  %v6156_v6 = vadd.f32 %v4612_v31, %v2882_v14 }
 0x1f5   : > { %v2977_v18 = vpop.f32.mrf.mxu0  ;;  %v4587_v42 = vpop.f32.mrf.mxu1 }
 0x1f6   : > { %6613 = vst [vmem:[#allocation16_spill] sm:$0xff] %v6156_v6  ;;  %v6158_v49 = vadd.f32 %v2977_v18, %v2880_v17  ;;  %v2891_v6 = vadd.f32 %v4587_v42, %v6082_v57 }
 0x1f7   : > { %v4613_v12 = vpop.f32.mrf.mxu0  ;;  %v2800_v40 = vpop.f32.mrf.mxu1 }
 0x1f8   : > { %6614 = vst [vmem:[#allocation18_spill] sm:$0xff] %v6158_v49  ;;  %v6160_v58 = vadd.f32 %v4613_v12, %v2883_v60 }
 0x1f9   : > { %v2980_v56 = vpop.f32.mrf.mxu0  ;;  %v6162_v33 = vpop.f32.mrf.mxu1 }
 0x1fa   : > { %6615 = vst [vmem:[#allocation20_spill] sm:$0xff] %v6160_v58  ;;  %6616 = vst [vmem:[#allocation22_spill] sm:$0xff] %v6162_v33  ;;  %v6164_v24 = vadd.f32 %v2980_v56, %v2881_v19 }
 0x1fb   : > { %v6166_v23 = vpop.f32.mrf.mxu0  ;;  %v6168_v50 = vpop.f32.mrf.mxu1 }
 0x1fc   : > { %6617 = vst [vmem:[#allocation9_spill] sm:$0xff] %v6164_v24  ;;  %6618 = vst [vmem:[#allocation5_spill] sm:$0xff] %v6168_v50 }
 0x1fd   : > { %v6170_v44 = vpop.f32.mrf.mxu0  ;;  %v6172_v14 = vpop.f32.mrf.mxu1 }
 0x1fe   : > { %6619 = vst [vmem:[#allocation7_spill] sm:$0xff] %v6172_v14 }
 0x1ff   : > { %v6174_v32 = vpop.f32.mrf.mxu0  ;;  %v6176_v17 = vpop.f32.mrf.mxu1 }
 0x200   : > { %6620 = vst [vmem:[#allocation4_spill] sm:$0xff] %v6176_v17 }
 0x201   : > { %v6178_v52 = vpop.f32.mrf.mxu0  ;;  %v6180_v60 = vpop.f32.mrf.mxu1 }
 0x203   : > { %v4620_v45 = vpop.f32.mrf.mxu0  ;;  %v6182_v63 = vpop.f32.mrf.mxu1 }
 0x204   : > { %6621 = vst [vmem:[#allocation24_spill] sm:$0xff] %v6182_v63 }
 0x205   : > { %v3009_v19 = vpop.f32.mrf.mxu0  ;;  %v6184_v51 = vpop.f32.mrf.mxu1 }
 0x207   : > { %v4621_v34 = vpop.f32.mrf.mxu0  ;;  %v6186_v48 = vpop.f32.mrf.mxu1 }
 0x208   : > { %6622 = vst [vmem:[#allocation3_spill] sm:$0xff] %v6186_v48  ;;  %v3103_v63 = vadd.f32 %v4621_v34, %v2891_v6 }
 0x209   : > { %v3012_v31 = vpop.f32.mrf.mxu0  ;;  %v4598_v18 = vpop.f32.mrf.mxu1 }
 0x20b   : > { %v6188_v12 = vpop.f32.mrf.mxu0  ;;  %v6190_v56 = vpop.f32.mrf.mxu1 }
 0x20c   : > { %6623 = vst [vmem:[#allocation12_spill] sm:$0xff] %v6188_v12 }
 0x20d   : > { %v6192_v59 = vpop.f32.mrf.mxu0  ;;  %v4599_v0 = vpop.f32.mrf.mxu1 }
 0x20e   : > { %6624 = vst [vmem:[#allocation13_spill] sm:$0xff] %v6192_v59 }
 0x20f   : > { %v6194_v47 = vpop.f32.mrf.mxu0  ;;  %v2848_v50 = vpop.f32.mrf.mxu1 }
 0x210   : > { %6625 = vst [vmem:[#allocation25_spill] sm:$0xff] %v6194_v47 }
 0x211   : > { %v6196_v9 = vpop.f32.mrf.mxu0  ;;  %v4602_v17 = vpop.f32.mrf.mxu1 }
 0x212   : > { %6626 = vst [vmem:[#allocation26_spill] sm:$0xff] %v6196_v9  ;;  %v2473_v9 = vadd.f32 %v6104_v10, %v6034_v46  ;;  %v2906_v58 = vadd.f32 %v4602_v17, %v6127_v35  ;;  %v2889_v46 = vadd.f32 %v2800_v40, %v6085_v43  ;;  %v2901_v40 = vadd.f32 %v2848_v50, %v6124_v41 }
 0x213   : > { %v6198_v4 = vpop.f32.mrf.mxu0  ;;  %v2861_v24 = vpop.f32.mrf.mxu1 }
 0x214   : > { %6627 = vst [vmem:[#allocation27_spill] sm:$0xff] %v6198_v4  ;;  %v2679_v5 = vadd.f32 %v6133_v22, %v2473_v9  ;;  %v2888_v22 = vadd.f32 %v6154_v29, %v6079_v37  ;;  %v2902_v37 = vadd.f32 %v4598_v18, %v6115_v26  ;;  %v6633_v18 = vld [vmem:[#allocation3_spill] sm:$0xff] }
 0x215   : > { %v6200_v15 = vpop.f32.mrf.mxu0  ;;  %v4603_v27 = vpop.f32.mrf.mxu1 }
 0x216   : > { %6628 = vst [vmem:[#allocation28_spill] sm:$0xff] %v6200_v15  ;;  %v2471_v15 = vadd.f32 %v6108_v38, %v6037_v53  ;;  %v2907_v16 = vadd.f32 %v4603_v27, %v2679_v5  ;;  %v6221_v53 = vld [vmem:[%s6484_s2] ss:$0 sm:$0xff]  ;;  %v2904_v38 = vadd.f32 %v2861_v24, %v6130_v21  ;;  %v3101_v27 = vadd.f32 %v3012_v31, %v2889_v46  ;;  %v6632_v31 = vld [vmem:[#allocation19_spill] sm:$0xff] }
 0x217   : > { %v6202_v49 = vpop.f32.mrf.mxu0  ;;  %v2864_v39 = vpop.f32.mrf.mxu1  ;;  %v2903_v5 = vadd.f32 %v4599_v0, %v6121_v55  ;;  %v2887_v21 = vadd.f32 %v6144_v8, %v6070_v28  ;;  %v2886_v55 = vadd.f32 %v6138_v61, %v6064_v30  ;;  %v2900_v61 = vadd.f32 %v6190_v56, %v6118_v54 }
 0x218   : > { %6629 = vst [vmem:[#allocation29_spill] sm:$0xff] %v6202_v49  ;;  %v2677_v48 = vadd.f32 %v6136_v20, %v2471_v15  ;;  %v3142_v15 = vadd.f32 %v6221_v53, %v3103_v63 }
 0x219   : > { %v6204_v1 = vpop.f32.mrf.mxu0  ;;  %v3098_v26 = vadd.f32 %v6166_v23, %v2886_v55  ;;  %v2899_v23 = vadd.f32 %v6184_v51, %v6110_v13  ;;  %v6643_v55 = vld [vmem:[#allocation10_spill] sm:$0xff] }
 0x21a   : > { %6630 = vst [vmem:[#allocation30_spill] sm:$0xff] %v6204_v1  ;;  %v2890_v1 = vadd.f32 %v4586_v36, %v6076_v25  ;;  %v2905_v35 = vadd.f32 %v2864_v39, %v2677_v48  ;;  %v3174_v0 = vmax.f32 %v3142_v15, 0.0 }
 0x21b   : > { %v4632_v12 = vpop.f32.mrf.mxu0  ;;  %v6634_v56 = vld [vmem:[#allocation27_spill] sm:$0xff] }
 0x21c   : > { %v3102_v57 = vadd.f32 %v4620_v45, %v2890_v1  ;;  %v3114_v28 = vadd.f32 %v4632_v12, %v2902_v37  ;;  %v2897_v12 = vadd.f32 %v6633_v18, %v6632_v31  ;;  %v6656_v31 = vld [vmem:[#allocation21_spill] sm:$0xff] }
 0x21d   : > { %v6206_v33 = vpop.f32.mrf.mxu0  ;;  %v3129_v18 = vadd.f32 %v6221_v53, %v6656_v31 }
 0x21e   : > { %v3141_v39 = vadd.f32 %v6221_v53, %v3102_v57  ;;  %v3153_v45 = vadd.f32 %v6221_v53, %v3114_v28  ;;  %v3112_v54 = vadd.f32 %v6206_v33, %v2900_v61 }
 0x21f   : > { %v4633_v59 = vpop.f32.mrf.mxu0 }
 0x220   : > { %v3115_v29 = vadd.f32 %v4633_v59, %v2903_v5  ;;  %v2885_v59 = vadd.f32 %v6148_v11, %v6073_v62  ;;  %v3173_v24 = vmax.f32 %v3141_v39, 0.0  ;;  %v3185_v46 = vmax.f32 %v3153_v45, 0.0  ;;  %v6638_v5 = vld [vmem:[#allocation20_spill] sm:$0xff]  ;;  %v6652_v45 = vld [vmem:[#allocation5_spill] sm:$0xff] }
 0x221   : > { %v3060_v47 = vpop.f32.mrf.mxu0  ;;  %v3151_v57 = vadd.f32 %v6221_v53, %v3112_v54  ;;  %v6641_v39 = vld [vmem:[#allocation28_spill] sm:$0xff] }
 0x222   : > { %v3113_v41 = vadd.f32 %v3060_v47, %v2901_v40  ;;  %v3097_v62 = vadd.f32 %v6178_v52, %v2885_v59  ;;  %v3137_v47 = vadd.f32 %v6221_v53, %v3098_v26  ;;  %v6631_v52 = vld [vmem:[#allocation29_spill] sm:$0xff] }
 0x223   : > { %v4636_v14 = vpop.f32.mrf.mxu0  ;;  %v3111_v34 = vadd.f32 %v6631_v52, %v2899_v23  ;;  %v3183_v37 = vmax.f32 %v3151_v57, 0.0  ;;  %v6646_v59 = vld [vmem:[#allocation9_spill] sm:$0xff]  ;;  %v6651_v23 = vld [vmem:[#allocation15_spill] sm:$0xff] }
 0x224   : > { %v3118_v49 = vadd.f32 %v4636_v14, %v2906_v58  ;;  %v3154_v14 = vadd.f32 %v6221_v53, %v3115_v29  ;;  %v3152_v13 = vadd.f32 %v6221_v53, %v3113_v41  ;;  %v3136_v33 = vadd.f32 %v6221_v53, %v3097_v62  ;;  %v6642_v29 = vld [vmem:[#allocation16_spill] sm:$0xff]  ;;  %v6650_v62 = vld [vmem:[#allocation18_spill] sm:$0xff]  ;;  %v6657_v57 = vld [vmem:[#allocation11_spill] sm:$0xff] }
 0x225   : > { %v3073_v4 = vpop.f32.mrf.mxu0  ;;  %v3132_v26 = vadd.f32 %v6221_v53, %v6646_v59  ;;  %v2892_v54 = vadd.f32 %v6652_v45, %v6651_v23 }
 0x226   : > { %v3157_v1 = vadd.f32 %v6221_v53, %v3118_v49  ;;  %v3116_v20 = vadd.f32 %v3073_v4, %v2904_v38  ;;  %v3099_v4 = vadd.f32 %v6174_v32, %v2887_v21  ;;  %v3140_v49 = vadd.f32 %v6221_v53, %v3101_v27  ;;  %v6636_v38 = vld [vmem:[#allocation24_spill] sm:$0xff] }
 0x227   : > { %v4637_v10 = vpop.f32.mrf.mxu0  ;;  %v2884_v32 = vadd.f32 %v6140_v7, %v6067_v2  ;;  %v2898_v7 = vadd.f32 %v6180_v60, %v6101_v3  ;;  %v3186_v48 = vmax.f32 %v3154_v14, 0.0  ;;  %v3169_v3 = vmax.f32 %v3137_v47, 0.0  ;;  %v6649_v14 = vld [vmem:[#allocation12_spill] sm:$0xff]  ;;  %v6653_v47 = vld [vmem:[#allocation26_spill] sm:$0xff] }
 0x228   : > { %v3119_v25 = vadd.f32 %v4637_v10, %v2907_v16  ;;  %v3100_v16 = vadd.f32 %v3009_v19, %v2888_v22  ;;  %v3189_v8 = vmax.f32 %v3157_v1, 0.0  ;;  %v3155_v58 = vadd.f32 %v6221_v53, %v3116_v20  ;;  %v6635_v10 = vld [vmem:[#allocation17_spill] sm:$0xff]  ;;  %v6637_v22 = vld [vmem:[#allocation30_spill] sm:$0xff]  ;;  %v6639_v20 = vld [vmem:[#allocation8_spill] sm:$0xff] }
 0x229   : > { %v3076_v43 = vpop.f32.mrf.mxu0  ;;  %v3138_v17 = vadd.f32 %v6221_v53, %v3099_v4  ;;  %v3172_v11 = vmax.f32 %v3140_v49, 0.0  ;;  %v3096_v19 = vadd.f32 %v6170_v44, %v2884_v32  ;;  %v3110_v44 = vadd.f32 %v6634_v56, %v2898_v7  ;;  %v6644_v4 = vld [vmem:[#allocation22_spill] sm:$0xff]  ;;  %v6645_v49 = vld [vmem:[#allocation25_spill] sm:$0xff] }
 0x22a   : > { %v3158_v9 = vadd.f32 %v6221_v53, %v3119_v25  ;;  %v3117_v36 = vadd.f32 %v3076_v43, %v2905_v35  ;;  %v3139_v30 = vadd.f32 %v6221_v53, %v3100_v16  ;;  %v3187_v63 = vmax.f32 %v3155_v58, 0.0  ;;  %v6654_v7 = vld [vmem:[#allocation6_spill] sm:$0xff] }
 0x22b   : > { %v3170_v51 = vmax.f32 %v3138_v17, 0.0  ;;  %v3135_v60 = vadd.f32 %v6221_v53, %v3096_v19  ;;  %v2896_v35 = vadd.f32 %v6636_v38, %v6635_v10  ;;  %v3150_v25 = vadd.f32 %v6221_v53, %v3111_v34 }
 0x22c   : > { %v3190_v6 = vmax.f32 %v3158_v9, 0.0  ;;  %v3156_v42 = vadd.f32 %v6221_v53, %v3117_v36  ;;  %v3171_v2 = vmax.f32 %v3139_v30, 0.0  ;;  %v3109_v15 = vadd.f32 %v6637_v22, %v2897_v12  ;;  %v6640_v9 = vld [vmem:[#allocation7_spill] sm:$0xff]  ;;  %v6648_v30 = vld [vmem:[#allocation4_spill] sm:$0xff] }
 0x22d   : > { %v3184_v27 = vmax.f32 %v3152_v13, 0.0  ;;  %v3134_v43 = vadd.f32 %v6221_v53, %v6638_v5  ;;  %v3168_v1 = vmax.f32 %v3136_v33, 0.0  ;;  %v2895_v36 = vadd.f32 %v6640_v9, %v6639_v20  ;;  %v6655_v13 = vld [vmem:[#allocation13_spill] sm:$0xff] }
 0x22e   : > { %4248 = vmatprep.subr.mxu1 %v3190_v6  ;;  %v3188_v50 = vmax.f32 %v3156_v42, 0.0  ;;  %v3149_v21 = vadd.f32 %v6221_v53, %v3110_v44  ;;  %v3108_v16 = vadd.f32 %v6641_v39, %v2896_v35  ;;  %v3133_v6 = vadd.f32 %v6221_v53, %v6642_v29  ;;  %v6658_v35 = vld [vmem:[#allocation23_spill] sm:$0xff] }
 0x22f   : > { %4249 = vmatpush3.msra.mxu1 %v3174_v0  ;;  %v3167_v42 = vmax.f32 %v3135_v60, 0.0  ;;  %v2894_v0 = vadd.f32 %v6644_v4, %v6643_v55  ;;  %v3107_v40 = vadd.f32 %v6645_v49, %v2895_v36  ;;  %v3182_v28 = vmax.f32 %v3150_v25, 0.0 }
 0x230   : > { %4250 = vmatprep.subr.mxu1 %v3189_v8  ;;  %v3148_v8 = vadd.f32 %v6221_v53, %v3109_v15  ;;  %v3166_v58 = vmax.f32 %v3134_v43, 0.0  ;;  %v3147_v32 = vadd.f32 %v6221_v53, %v3108_v16  ;;  %v3165_v17 = vmax.f32 %v3133_v6, 0.0 }
 0x231   : > { %4251 = vmatpush3.msra.mxu1 %v3173_v24  ;;  %v6647_v24 = vld [vmem:[#allocation14_spill] sm:$0xff]  ;;  %v3106_v41 = vadd.f32 %v6649_v14, %v2894_v0  ;;  %v3130_v52 = vadd.f32 %v6221_v53, %v6654_v7  ;;  %v3164_v34 = vmax.f32 %v3132_v26, 0.0  ;;  %v3161_v38 = vmax.f32 %v3129_v18, 0.0 }
 0x232   : > { %4252 = vmatprep.subr.mxu1 %v3188_v50  ;;  %v2893_v61 = vadd.f32 %v6648_v30, %v6647_v24  ;;  %v3181_v50 = vmax.f32 %v3149_v21, 0.0  ;;  %v3179_v33 = vmax.f32 %v3147_v32, 0.0  ;;  %v3127_v25 = vadd.f32 %v6221_v53, %v6658_v35 }
 0x233   : > { %4253 = vmatpush3.msra.mxu1 %v3172_v11  ;;  %v3131_v11 = vadd.f32 %v6221_v53, %v6650_v62  ;;  %v6659_v43 = vmov 0.00390625  }
 0x234   : > { %4254 = vmatprep.subr.mxu1 %v3187_v63  ;;  %v3146_v63 = vadd.f32 %v6221_v53, %v3107_v40  ;;  %v3105_v19 = vadd.f32 %v6653_v47, %v2893_v61  ;;  %v3159_v5 = vmax.f32 %v3127_v25, 0.0 }
 0x235   : > { %4255 = vmatpush3.msra.mxu1 %v3171_v2  ;;  %v3180_v2 = vmax.f32 %v3148_v8, 0.0  ;;  %v3163_v12 = vmax.f32 %v3131_v11, 0.0 }
 0x236   : > { %4256 = vmatprep.subr.mxu1 %v3186_v48  ;;  %v3145_v48 = vadd.f32 %v6221_v53, %v3106_v41  ;;  %v3178_v56 = vmax.f32 %v3146_v63, 0.0  ;;  %v3144_v44 = vadd.f32 %v6221_v53, %v3105_v19 }
 0x237   : > { %4257 = vmatpush3.msra.mxu1 %v3170_v51  ;;  %v3104_v51 = vadd.f32 %v6655_v13, %v2892_v54 }
 0x238   : > { %4258 = vmatprep.subr.mxu1 %v3185_v46  ;;  %v3162_v46 = vmax.f32 %v3130_v52, 0.0  ;;  %v3177_v60 = vmax.f32 %v3145_v48, 0.0  ;;  %v3176_v22 = vmax.f32 %v3144_v44, 0.0 }
 0x239   : > { %4259 = vmatpush3.msra.mxu1 %v3169_v3  ;;  %v3128_v3 = vadd.f32 %v6221_v53, %v6657_v57  ;;  %v3143_v10 = vadd.f32 %v6221_v53, %v3104_v51 }
 0x23a   : > { %4260 = vmatprep.subr.mxu1 %v3184_v27 }
 0x23b   : > { %4261 = vmatpush3.msra.mxu1 %v3168_v1  ;;  %v3160_v15 = vmax.f32 %v3128_v3, 0.0  ;;  %v3175_v27 = vmax.f32 %v3143_v10, 0.0 }
 0x23c   : > { %4262 = vmatprep.subr.mxu1 %v3183_v37 }
 0x23d   : > { %4263 = vmatpush3.msra.mxu1 %v3167_v42 }
 0x23e   : > { %4264 = vmatprep.subr.mxu1 %v3182_v28 }
 0x23f   : > { %4265 = vmatpush3.msra.mxu1 %v3166_v58 }
 0x240   : > { %4266 = vmatprep.subr.mxu1 %v3181_v50 }
 0x241   : > { %4267 = vmatpush3.msra.mxu1 %v3165_v17 }
 0x242   : > { %4268 = vmatprep.subr.mxu1 %v3180_v2 }
 0x243   : > { %4269 = vmatpush3.msra.mxu1 %v3164_v34 }
 0x244   : > { %4270 = vmatprep.subr.mxu1 %v3179_v33 }
 0x245   : > { %4271 = vmatpush3.msra.mxu1 %v3163_v12 }
 0x246   : > { %4272 = vmatprep.subr.mxu1 %v3178_v56 }
 0x247   : > { %4273 = vmatpush3.msra.mxu1 %v3162_v46 }
 0x248   : > { %4274 = vmatprep.subr.mxu1 %v3177_v60 }
 0x249   : > { %4275 = vmatpush3.msra.mxu1 %v3161_v38 }
 0x24a   : > { %4276 = vmatprep.subr.mxu1 %v3176_v22 }
 0x24b   : > { %4277 = vmatpush3.msra.mxu1 %v3160_v15 }
 0x24c   : > { %4278 = vmatprep.subr.mxu1 %v3175_v27 }
 0x24d   : > { %4279 = vmatpush3.msra.mxu1 %v3159_v5 }
 0x24e   : > { %3256 = vmatmul.mubr.f32.vlgmr.msra.gmra.mxu1 %v6659_v43 }
 0x30e   : > { %v4280_v1 = vpop.f32.mrf.mxu1 }
 0x30f   : > { %3266 = sbr.rel (%p4045_p5) target bundleno = 1620 (0x654), region = 76 }
 0x310   : > { %v4281_v20 = vpop.f32.mrf.mxu1 }
 0x311   : > { %v4282_v9 = vadd.f32 %v4281_v20, %v4280_v1 }
 0x313   : > { %4094 = vst [vmem:[%s4092_s14 - $0x1] sm:$0x1] %v4282_v9 }
 0x314   : > { %v4741_v53 = vld [vmem:[%s6486_s4 + $0x38] sm:$0xff]   ;;  %v4791_v36 = vmov 0.0   ;;  %v4742_v21 = vld [vmem:[%s6486_s4 + $0x30] sm:$0xff]   ;;  %vm4792_vm8 = vmmov 0   ;;  %v4743_v39 = vld [vmem:[%s6486_s4 + $0x28] sm:$0xff]  }
 0x315   : > { %4638 = vmatprep.subr.bf16.mxu0 %v4791_v36  ;;  %4654 = vmatprep.mubr.msk.bf16.mxu0 %vm4792_vm8, %v4791_v36  ;;  %v4744_v16 = vld [vmem:[%s6486_s4 + $0x20] sm:$0xff]   ;;  %v4749_v37 = vld [vmem:[%s6488_s6 + $0x78] sm:$0xff]   ;;  %v4751_v6 = vld [vmem:[%s6488_s6 + $0x70] sm:$0xff]  }
 0x316   : > { %4639 = vmatpush3.bf16.msra.mxu0 %v4741_v53  ;;  %v4750_v29 = vld [vmem:[%s6488_s6 + $0x38] sm:$0xff]   ;;  %4292 = vmatprep.subr.bf16.mxu1 %v4749_v37  ;;  %v4752_v42 = vld [vmem:[%s6488_s6 + $0x30] sm:$0xff]   ;;  %v4753_v55 = vld [vmem:[%s6488_s6 + $0x68] sm:$0xff]  }
 0x317   : > { %4640 = vmatprep.subr.bf16.mxu0 %v4791_v36  ;;  %4293 = vmatpush3.bf16.msra.mxu1 %v4750_v29  ;;  %v4745_v4 = vld [vmem:[%s6486_s4 + $0x18] sm:$0xff]   ;;  %v4754_v0 = vld [vmem:[%s6488_s6 + $0x28] sm:$0xff]   ;;  %v4755_v49 = vld [vmem:[%s6488_s6 + $0x60] sm:$0xff]  }
 0x318   : > { %4294 = vmatprep.subr.bf16.mxu1 %v4751_v6  ;;  %v4746_v40 = vld [vmem:[%s6486_s4 + $0x10] sm:$0xff]   ;;  %v4747_v28 = vld [vmem:[%s6486_s4 + $0x8] sm:$0xff]   ;;  %v4756_v8 = vld [vmem:[%s6488_s6 + $0x20] sm:$0xff]  }
 0x319   : > { %v4757_v58 = vld [vmem:[%s6488_s6 + $0x58] sm:$0xff]   ;;  %v4759_v26 = vld [vmem:[%s6488_s6 + $0x50] sm:$0xff]   ;;  %v4748_v24 = vld [vmem:[%s6486_s4] sm:$0xff]  }
 0x31a   : > { %4641 = vmatpush3.bf16.msra.mxu0 %v4742_v21  ;;  %v4758_v59 = vld [vmem:[%s6488_s6 + $0x18] sm:$0xff]   ;;  %v4760_v30 = vld [vmem:[%s6488_s6 + $0x10] sm:$0xff]   ;;  %v4761_v61 = vld [vmem:[%s6488_s6 + $0x48] sm:$0xff]  }
 0x31b   : > { %4642 = vmatprep.subr.bf16.mxu0 %v4791_v36  ;;  %4295 = vmatpush3.bf16.msra.mxu1 %v4752_v42  ;;  %v3267_v14 = vld [vmem:[%s6485_s3] sm:$0xf]  ;;  %v4762_v41 = vld [vmem:[%s6488_s6 + $0x8] sm:$0xff]   ;;  %v4765_v17 = vld [vmem:[%s6490_s8 + $0x38] sm:$0xff]  }
 0x31c   : > { %4296 = vmatprep.subr.bf16.mxu1 %v4753_v55  ;;  %v4763_v50 = vld [vmem:[%s6488_s6 + $0x40] sm:$0xff]   ;;  %v4766_v62 = vld [vmem:[%s6490_s8 + $0x30] sm:$0xff]   ;;  %v4767_v11 = vld [vmem:[%s6490_s8 + $0x28] sm:$0xff]  }
 0x31d   : > { %v4764_v32 = vld [vmem:[%s6488_s6] sm:$0xff]   ;;  %v4769_v45 = vld [vmem:[%s6490_s8 + $0x18] sm:$0xff]   ;;  %v4770_v13 = vld [vmem:[%s6490_s8 + $0x10] sm:$0xff]  }
 0x31e   : > { %4643 = vmatpush3.bf16.msra.mxu0 %v4743_v39  ;;  %v4768_v23 = vld [vmem:[%s6490_s8 + $0x20] sm:$0xff]   ;;  %v4771_v51 = vld [vmem:[%s6490_s8 + $0x8] sm:$0xff]   ;;  %v4773_v31 = vld [vmem:[%s6492_s10 + $0x38] sm:$0xff]  }
 0x31f   : > { %4644 = vmatprep.subr.bf16.mxu0 %v4791_v36  ;;  %4297 = vmatpush3.bf16.msra.mxu1 %v4754_v0  ;;  %v4046_v54 = vld [vmem:[%s6487_s5] ss:$0 sm:$0xff]  ;;  %v4774_v18 = vld [vmem:[%s6492_s10 + $0x30] sm:$0xff]   ;;  %v4775_v12 = vld [vmem:[%s6492_s10 + $0x28] sm:$0xff]  }
 0x320   : > { %4298 = vmatprep.subr.bf16.mxu1 %v4755_v49  ;;  %v3379_v63 = vld [vmem:[#allocation2] sm:$0xff]  ;;  %v4777_v44 = vld [vmem:[%s6492_s10 + $0x18] sm:$0xff]   ;;  %v4778_v46 = vld [vmem:[%s6492_s10 + $0x10] sm:$0xff]  }
 0x321   : > { %v3380_v7 = vpack.c.bf16 %v3379_v63, %v3379_v63  ;;  %v4772_v33 = vld [vmem:[%s6490_s8] sm:$0xff]   ;;  %v4779_v27 = vld [vmem:[%s6492_s10 + $0x8] sm:$0xff]  }
 0x322   : > { %4645 = vmatpush3.bf16.msra.mxu0 %v4744_v16  ;;  %v4776_v56 = vld [vmem:[%s6492_s10 + $0x20] sm:$0xff]  }
 0x323   : > { %4646 = vmatprep.subr.bf16.mxu0 %v4791_v36  ;;  %4299 = vmatpush3.bf16.msra.mxu1 %v4756_v8  ;;  %v4055_v3 = vld [vmem:[%s6489_s7] ss:$0 sm:$0xff] }
 0x324   : > { %4300 = vmatprep.subr.bf16.mxu1 %v4757_v58  ;;  %v4780_v5 = vld [vmem:[%s6492_s10] sm:$0xff]  }
 0x325   : > { %v4072_v43 = vld [vmem:[%s6491_s9] ss:$0 sm:$0xff] }
 0x326   : > { %4647 = vmatpush3.bf16.msra.mxu0 %v4745_v4 }
 0x327   : > { %4648 = vmatprep.subr.bf16.mxu0 %v4791_v36  ;;  %4301 = vmatpush3.bf16.msra.mxu1 %v4758_v59 }
 0x328   : > { %4302 = vmatprep.subr.bf16.mxu1 %v4759_v26 }
 0x32a   : > { %4649 = vmatpush3.bf16.msra.mxu0 %v4746_v40 }
 0x32b   : > { %4650 = vmatprep.subr.bf16.mxu0 %v4791_v36  ;;  %4303 = vmatpush3.bf16.msra.mxu1 %v4760_v30 }
 0x32c   : > { %4304 = vmatprep.subr.bf16.mxu1 %v4761_v61 }
 0x32e   : > { %4651 = vmatpush3.bf16.msra.mxu0 %v4747_v28 }
 0x32f   : > { %4652 = vmatprep.subr.bf16.mxu0 %v4791_v36  ;;  %4305 = vmatpush3.bf16.msra.mxu1 %v4762_v41 }
 0x330   : > { %4306 = vmatprep.subr.bf16.mxu1 %v4763_v50 }
 0x332   : > { %4653 = vmatpush3.bf16.msra.mxu0 %v4748_v24 }
 0x333   : > { %4658 = vmatprep.subr.bf16.mxu0 %v4791_v36  ;;  %4307 = vmatpush3.bf16.msra.mxu1 %v4764_v32 }
 0x334   : > { %4678 = vmatprep.subr.bf16.mxu1 %v4791_v36 }
 0x335   : > { %4655 = vmatmul.mubr.bf16.vlgmr.msra.gmra.mxu0 %v3267_v14 }
 0x336   : > { %4674 = vmatprep.mubr.msk.bf16.mxu0 %vm4792_vm8, %v4791_v36  ;;  %4659 = vmatpush3.bf16.msra.mxu0 %v4765_v17 }
 0x337   : > { %4660 = vmatprep.subr.bf16.mxu0 %v4791_v36 }
 0x33a   : > { %4661 = vmatpush3.bf16.msra.mxu0 %v4766_v62 }
 0x33b   : > { %4662 = vmatprep.subr.bf16.mxu0 %v4791_v36 }
 0x33e   : > { %4663 = vmatpush3.bf16.msra.mxu0 %v4767_v11 }
 0x33f   : > { %4664 = vmatprep.subr.bf16.mxu0 %v4791_v36 }
 0x342   : > { %4665 = vmatpush3.bf16.msra.mxu0 %v4768_v23 }
 0x343   : > { %4666 = vmatprep.subr.bf16.mxu0 %v4791_v36 }
 0x346   : > { %4667 = vmatpush3.bf16.msra.mxu0 %v4769_v45 }
 0x347   : > { %4668 = vmatprep.subr.bf16.mxu0 %v4791_v36 }
 0x34a   : > { %4669 = vmatpush3.bf16.msra.mxu0 %v4770_v13 }
 0x34b   : > { %4670 = vmatprep.subr.bf16.mxu0 %v4791_v36 }
 0x34e   : > { %4671 = vmatpush3.bf16.msra.mxu0 %v4771_v51 }
 0x34f   : > { %4672 = vmatprep.subr.bf16.mxu0 %v4791_v36 }
 0x352   : > { %4673 = vmatpush3.bf16.msra.mxu0 %v4772_v33 }
 0x3f5   : > { %v3373_v47 = vpop.f32.mrf.mxu0 }
 0x3f6   : > { %v3374_v19 = vadd.f32 %v4046_v54, %v3373_v47 }
 0x3f7   : > { %v4656_v2 = vpop.f32.mrf.mxu0 }
 0x3f8   : > { %v3381_v52 = vpack.c.bf16 %v3374_v19, %v3374_v19 }
 0x3f9   : > { %v3376_v34 = vpop.f32.mrf.mxu0 }
 0x3fa   : > { %3549 = vmatprep.mubr.bf16.mxu1 %v3381_v52 }
 0x3fb   : > { %v4657_v48 = vpop.f32.mrf.mxu0  ;;  %3550 = vmatmul.mubr.bf16.vlgmr.msra.gmra.mxu1 %v3380_v7 }
 0x3fc   : > { %4694 = vmatprep.mubr.msk.bf16.mxu1 %vm4792_vm8, %v4791_v36  ;;  %4679 = vmatpush3.bf16.msra.mxu1 %v4773_v31 }
 0x3fd   : > { %4680 = vmatprep.subr.bf16.mxu1 %v4791_v36 }
 0x400   : > { %4681 = vmatpush3.bf16.msra.mxu1 %v4774_v18 }
 0x401   : > { %4682 = vmatprep.subr.bf16.mxu1 %v4791_v36 }
 0x404   : > { %4683 = vmatpush3.bf16.msra.mxu1 %v4775_v12 }
 0x405   : > { %4684 = vmatprep.subr.bf16.mxu1 %v4791_v36 }
 0x408   : > { %4685 = vmatpush3.bf16.msra.mxu1 %v4776_v56 }
 0x409   : > { %4686 = vmatprep.subr.bf16.mxu1 %v4791_v36 }
 0x40c   : > { %4687 = vmatpush3.bf16.msra.mxu1 %v4777_v44 }
 0x40d   : > { %4688 = vmatprep.subr.bf16.mxu1 %v4791_v36 }
 0x410   : > { %4689 = vmatpush3.bf16.msra.mxu1 %v4778_v46 }
 0x411   : > { %4690 = vmatprep.subr.bf16.mxu1 %v4791_v36 }
 0x414   : > { %4691 = vmatpush3.bf16.msra.mxu1 %v4779_v27 }
 0x415   : > { %4692 = vmatprep.subr.bf16.mxu1 %v4791_v36  ;;  %v4081_v36 = vld [vmem:[%s6493_s11] ss:$0 sm:$0xff] }
 0x418   : > { %4693 = vmatpush3.bf16.msra.mxu1 %v4780_v5 }
 0x4bb   : > { %v4308_v57 = vpop.f32.mrf.mxu1 }
 0x4bd   : > { %v4309_v60 = vpop.f32.mrf.mxu1 }
 0x4be   : > { %v4310_v10 = vadd.f32 %v4309_v60, %v4308_v57 }
 0x4bf   : > { %v4311_v38 = vpop.f32.mrf.mxu1 }
 0x4c0   : > { %v3552_v35 = vadd.f32 %v4310_v10, %v4055_v3 }
 0x4c1   : > { %v4312_v25 = vpop.f32.mrf.mxu1 }
 0x4c2   : > { %v3557_v22 = vmax.f32 %v3552_v35, 0.0 }
 0x4c4   : > { %v3558_v15 = vpack.c.bf16 %v3557_v22, %v3557_v22 }
 0x4c6   : > { %4675 = vmatmul.mubr.bf16.vlgmr.msra.gmra.mxu0 %v3558_v15 }
 0x586   : > { %v3664_v1 = vpop.f32.mrf.mxu0 }
 0x587   : > { %v3665_v20 = vadd.f32 %v4072_v43, %v3664_v1 }
 0x588   : > { %v4676_v9 = vpop.f32.mrf.mxu0 }
 0x589   : > { %v3670_v53 = vmax.f32 %v3665_v20, 0.0 }
 0x58a   : > { %v3667_v21 = vpop.f32.mrf.mxu0 }
 0x58b   : > { %v3671_v39 = vpack.c.bf16 %v3670_v53, %v3670_v53 }
 0x58c   : > { %v4677_v16 = vpop.f32.mrf.mxu0 }
 0x58d   : > { %4695 = vmatmul.mubr.bf16.vlgmr.msra.gmra.mxu1 %v3671_v39 }
 0x64d   : > { %v3777_v37 = vpop.f32.mrf.mxu1 }
 0x64e   : > { %v3778_v29 = vadd.f32 %v4081_v36, %v3777_v37 }
 0x64f   : > { %v4696_v6 = vpop.f32.mrf.mxu1 }
 0x650   : > { %3783 = vst [vmem:[%s6494_s12] sm:$0xff] %v3778_v29 }
 0x651   : > { %v3780_v42 = vpop.f32.mrf.mxu1 }
 0x653   : > { %v4697_v55 = vpop.f32.mrf.mxu1 }
 0x654 PF: > { %s22_s21 = sadd.s32 1, %s4787_s21  }
 0x655   : > { %p19_p6 = scmp.ge.s32.totalorder %s22_s21, 4  }
 0x657   :  { %21 = sbr.rel (!%p19_p6) target bundleno = 1 (0x1), region = 111 }

</bundles_post_ra>
